<compile_context>
chip_gen: v5e
topology: v5e:2x2
jax: 0.10.0
libtpu: 0.0.40
codegen_flags: <defaults>
</compile_context>

<pallas_src>
import math

import jax
import jax.numpy as jnp
from jax.experimental import pallas as pl
from jax.experimental.pallas import tpu as pltpu

LOGITS = 17      # real output width (3 sigmoid + 12 raw + 2 raw)
LANE = 128       # lane padding for layer-4 / output
SIG_HEAD = 3     # first 3 logits go through sigmoid


def _round_up(n, m):
    return ((n + m - 1) // m) * m


def _cdiv(a, b):
    return -(-a // b)


# --------------------------------------------------------------------------
# Kernel
# --------------------------------------------------------------------------
def mlp_kernel(x_ref, w1_ref, b1_ref, w2_ref, b2_ref, w3_ref, b3_ref,
               w4_ref, b4_ref, out_ref):
    # x: (TB, 8) f32; weights bf16 pre-transposed (in, out); biases f32 (1, out)
    x = x_ref[...]

    def dense(h, w_ref, b_ref):
        # bf16 x bf16 MXU matmul with f32 accumulation; bias add stays f32 (VPU).
        acc = jnp.dot(h.astype(jnp.bfloat16), w_ref[...],
                      preferred_element_type=jnp.float32)
        return acc + b_ref[...]

    h = jnp.maximum(dense(x, w1_ref, b1_ref), 0.0)      # (TB, 128)
    h = jnp.maximum(dense(h, w2_ref, b2_ref), 0.0)      # (TB, 256)
    h = jnp.maximum(dense(h, w3_ref, b3_ref), 0.0)      # (TB, 256)
    o = dense(h, w4_ref, b4_ref)                        # (TB, 128); lanes >= 17 are 0

    # Sigmoid on the full width (EUP slot is otherwise idle), selected only on
    # the first SIG_HEAD lanes via a (1, 128) mask that jnp.where broadcasts —
    # avoids a (TB, 128) iota + compare on the critical path each grid step.
    lane = jax.lax.broadcasted_iota(jnp.int32, (1, LANE), 1)
    sig_mask = lane < SIG_HEAD
    out_ref[...] = jnp.where(sig_mask, jax.nn.sigmoid(o), o).astype(out_ref.dtype)


# --------------------------------------------------------------------------
# Wrapper
# --------------------------------------------------------------------------
def _is_v7x():
    """Best-effort detection of a 2-TensorCore (v7x) chip."""
    try:
        kind = jax.devices()[0].device_kind.lower()
    except Exception:
        return False
    return ("v7" in kind) or ("7x" in kind)


def _choose_batch_tile(B, batch_tile, min_steps=1):
    """Adaptive batch tile.

    Balances rows across the grid steps implied by `batch_tile` so zero-row
    padding stays within one sublane pack, then prefers rounding up to a
    256-row multiple (v6e/v7x MXU M-cadence) only when that costs no extra
    padding. `min_steps` > 1 forces a splittable grid (v7x dual-core)."""
    batch_tile = max(8, _round_up(batch_tile, 8))
    n_steps = max(min_steps, _cdiv(B, batch_tile))
    per_step = _cdiv(B, n_steps)

    tb8 = _round_up(per_step, 8)
    tb256 = min(_round_up(per_step, 256), _round_up(batch_tile, 256))
    pad8 = _round_up(B, tb8) - B
    pad256 = _round_up(B, tb256) - B

    if pad256 <= pad8 and _round_up(B, tb256) // tb256 >= min_steps:
        return tb256
    return tb8


def _forward_pallas(x, params, tb, b_pad, grid_sem, single_buffer_weights,
                    out_dtype):
    w1, b1, w2, b2, w3, b3, w4, b4 = params
    grid = b_pad // tb

    # Weights/biases: constant index_map => DMA'd once, resident in VMEM for
    # every batch-tile step. With single_buffer_weights the redundant second
    # pipeline buffer (~258 KB doubled) is dropped.
    const = lambda i: (0, 0)
    wkw = dict(pipeline_mode=pl.Buffered(1)) if single_buffer_weights else {}

    def wspec(arr):
        return pl.BlockSpec(arr.shape, const, **wkw)

    # Rough scoped-VMEM need: double-buffered x/out tiles + f32 intermediates
    # + resident bf16 weights. Only raise the limit when a very large tile
    # would approach v5e's 16 MiB scoped default (v6e/v7x defaults are 32 MiB).
    weight_bytes = (1 if single_buffer_weights else 2) * (300 << 10)
    vmem_est = (2 * tb * 8 * 4 + 2 * tb * LANE * 4
                + tb * (128 + 256 + 256) * 4 + weight_bytes)
    cp_kwargs = dict(dimension_semantics=(grid_sem,))
    if vmem_est > (8 << 20):
        cp_kwargs["vmem_limit_bytes"] = min(2 * vmem_est, 64 << 20)

    return pl.pallas_call(
        mlp_kernel,
        out_shape=jax.ShapeDtypeStruct((b_pad, LANE), out_dtype),
        grid_spec=pltpu.PrefetchScalarGridSpec(
            num_scalar_prefetch=0,
            grid=(grid,),
            in_specs=[
                pl.BlockSpec((tb, 8), lambda i: (i, 0)),   # x batch tile
                wspec(w1), wspec(b1),                      # (8, 128)   bf16 / (1, 128)  f32
                wspec(w2), wspec(b2),                      # (128, 256) bf16 / (1, 256)  f32
                wspec(w3), wspec(b3),                      # (256, 256) bf16 / (1, 256)  f32
                wspec(w4), wspec(b4),                      # (256, 128) bf16 / (1, 128)  f32 (zero-padded)
            ],
            out_specs=pl.BlockSpec((tb, LANE), lambda i: (i, 0)),
        ),
        compiler_params=pltpu.CompilerParams(**cp_kwargs),
    )(x, w1, b1, w2, b2, w3, b3, w4, b4)


_SAFE_MODE = False   # set if single-buffered weights / this config is rejected


def mlp_net_forward(state, params, *, batch_tile=512, out_dtype=jnp.float32):
    """state: (8,) or (B, 8) float32.
    Returns (out1, out2, out3) of widths 3 / 12 / 2, leading batch dim
    preserved iff the input had one. out_dtype=jnp.bfloat16 halves the output
    writeback if bf16 logits are acceptable downstream (default keeps f32)."""
    global _SAFE_MODE

    squeeze = state.ndim == 1
    x = state.reshape(1, -1) if squeeze else state
    x = x.astype(jnp.float32)
    B = x.shape[0]

    # v7x: shard the batch axis across the 2 TensorCores; make sure there are
    # at least 2 grid steps to shard when the batch is splittable.
    use_core_parallel = _is_v7x()
    min_steps = 2 if (use_core_parallel and B >= 16) else 1

    tb = _choose_batch_tile(B, batch_tile, min_steps=min_steps)
    b_pad = _round_up(B, tb)
    if b_pad != B:
        x = jnp.pad(x, ((0, b_pad - B), (0, 0)))
    grid = b_pad // tb
    grid_sem = (pltpu.CORE_PARALLEL
                if (use_core_parallel and grid >= 2) else pltpu.PARALLEL)

    out = None
    if not _SAFE_MODE:
        try:
            out = _forward_pallas(x, params, tb, b_pad, grid_sem,
                                  single_buffer_weights=True,
                                  out_dtype=out_dtype)
        except Exception:
            # Fall back (once) to plain double-buffered specs + PARALLEL if
            # this JAX/Mosaic version rejects the tuned configuration.
            _SAFE_MODE = True
    if out is None:
        out = _forward_pallas(x, params, tb, b_pad, pltpu.PARALLEL,
                              single_buffer_weights=False,
                              out_dtype=out_dtype)

    out = out[:B, :LOGITS]
    out1, out2, out3 = out[:, 0:3], out[:, 3:15], out[:, 15:17]
    if squeeze:
        out1, out2, out3 = out1.reshape(3), out2.reshape(12), out3.reshape(2)
    return out1, out2, out3


# --------------------------------------------------------------------------
# Params + pure-JAX reference
# --------------------------------------------------------------------------
def init_params(key):
    """nn.Linear-style init (uniform +/- 1/sqrt(fan_in)). Weights stored
    pre-transposed (in, out) in bf16, output dim zero-padded to a multiple of
    128 lanes (only layer 4: 17 -> 128). Biases stay f32, shape (1, out_pad),
    with padded entries exactly zero so they never leak into real logits."""
    dims = [(8, 128), (128, 256), (256, 256), (256, LOGITS)]
    params = []
    for fan_in, fan_out in dims:
        key, kw, kb = jax.random.split(key, 3)
        bound = 1.0 / math.sqrt(fan_in)
        w = jax.random.uniform(kw, (fan_in, fan_out), jnp.float32, -bound, bound)
        b = jax.random.uniform(kb, (fan_out,), jnp.float32, -bound, bound)
        out_pad = _round_up(fan_out, LANE)
        if out_pad != fan_out:
            w = jnp.pad(w, ((0, 0), (0, out_pad - fan_out)))
            b = jnp.pad(b, ((0, out_pad - fan_out),))
        params.extend([w.astype(jnp.bfloat16), b.reshape(1, out_pad)])
    return tuple(params)


def reference_forward(state, params):
    """Pure-JAX reference with the same numerics as the kernel
    (bf16 matmul inputs, f32 accumulation, f32 bias/ReLU/sigmoid)."""
    w1, b1, w2, b2, w3, b3, w4, b4 = params
    squeeze = state.ndim == 1
    h = (state.reshape(1, -1) if squeeze else state).astype(jnp.float32)

    def dense(h, w, b):
        return jnp.dot(h.astype(jnp.bfloat16), w,
                       preferred_element_type=jnp.float32) + b

    h = jnp.maximum(dense(h, w1, b1), 0.0)
    h = jnp.maximum(dense(h, w2, b2), 0.0)
    h = jnp.maximum(dense(h, w3, b3), 0.0)
    o = dense(h, w4, b4)[:, :LOGITS]
    o1, o2, o3 = jax.nn.sigmoid(o[:, 0:3]), o[:, 3:15], o[:, 15:17]
    if squeeze:
        o1, o2, o3 = o1.reshape(3), o2.reshape(12), o3.reshape(2)
    return o1, o2, o3


# --------------------------------------------------------------------------
# Demo / self-test
# --------------------------------------------------------------------------
if __name__ == "__main__":
    key = jax.random.PRNGKey(0)
    key, kp, ks_b, ks_m, ks_1 = jax.random.split(key, 5)
    params = init_params(kp)

    # Small batch (single grid step).
    states = jax.random.normal(ks_b, (8, 8), jnp.float32)
    o1, o2, o3 = jax.block_until_ready(mlp_net_forward(states, params))
    r1, r2, r3 = reference_forward(states, params)
    assert o1.shape == (8, 3) and o2.shape == (8, 12) and o3.shape == (8, 2)
    assert jnp.allclose(o1, r1, atol=1e-4, rtol=1e-4)
    assert jnp.allclose(o2, r2, atol=1e-4, rtol=1e-4)
    assert jnp.allclose(o3, r3, atol=1e-4, rtol=1e-4)

    # Batch that is not a tile multiple, with batch_tile forced small so the
    # 1-D grid has several steps (exercises adaptive tiling + tail padding).
    states_m = jax.random.normal(ks_m, (300, 8), jnp.float32)
    m1, m2, m3 = jax.block_until_ready(
        mlp_net_forward(states_m, params, batch_tile=128))
    q1, q2, q3 = reference_forward(states_m, params)
    assert m1.shape == (300, 3) and m2.shape == (300, 12) and m3.shape == (300, 2)
    assert jnp.allclose(m1, q1, atol=1e-4, rtol=1e-4)
    assert jnp.allclose(m2, q2, atol=1e-4, rtol=1e-4)
    assert jnp.allclose(m3, q3, atol=1e-4, rtol=1e-4)

    # Single-state path (original module semantics: 1-D state of length 8).
    state = jax.random.normal(ks_1, (8,), jnp.float32)
    s1, s2, s3 = jax.block_until_ready(mlp_net_forward(state, params))
    t1, t2, t3 = reference_forward(state, params)
    assert s1.shape == (3,) and s2.shape == (12,) and s3.shape == (2,)
    assert jnp.allclose(s1, t1, atol=1e-4, rtol=1e-4)
    assert jnp.allclose(s2, t2, atol=1e-4, rtol=1e-4)
    assert jnp.allclose(s3, t3, atol=1e-4, rtol=1e-4)

    print("KERNEL_OK")
</pallas_src>

<mosaic_0001>
module attributes {stable_mosaic.version = 11 : i64} {
  func.func @mlp_kernel(%arg0: i32, %arg1: memref<8x8xf32, #tpu.memory_space<vmem>>, %arg2: memref<8x128xbf16, #tpu.memory_space<vmem>>, %arg3: memref<1x128xf32, #tpu.memory_space<vmem>>, %arg4: memref<128x256xbf16, #tpu.memory_space<vmem>>, %arg5: memref<1x256xf32, #tpu.memory_space<vmem>>, %arg6: memref<256x256xbf16, #tpu.memory_space<vmem>>, %arg7: memref<1x256xf32, #tpu.memory_space<vmem>>, %arg8: memref<256x128xbf16, #tpu.memory_space<vmem>>, %arg9: memref<1x128xf32, #tpu.memory_space<vmem>>, %arg10: memref<8x128xf32, #tpu.memory_space<vmem>>) attributes {dimension_semantics = [#tpu.dimension_semantics<parallel>], iteration_bounds = array<i64: 1>, scalar_prefetch = 0 : i64, scratch_operands = 0 : i64, tpu.core_type = #tpu.core_type<tc>, window_params = [{transform_indices = @transform_0, window_bounds = array<i64: 8, 8>}, {pipeline_mode = #tpu.pipeline_mode<synchronous>, transform_indices = @transform_1, window_bounds = array<i64: 8, 128>}, {pipeline_mode = #tpu.pipeline_mode<synchronous>, transform_indices = @transform_2, window_bounds = array<i64: 1, 128>}, {pipeline_mode = #tpu.pipeline_mode<synchronous>, transform_indices = @transform_3, window_bounds = array<i64: 128, 256>}, {pipeline_mode = #tpu.pipeline_mode<synchronous>, transform_indices = @transform_4, window_bounds = array<i64: 1, 256>}, {pipeline_mode = #tpu.pipeline_mode<synchronous>, transform_indices = @transform_5, window_bounds = array<i64: 256, 256>}, {pipeline_mode = #tpu.pipeline_mode<synchronous>, transform_indices = @transform_6, window_bounds = array<i64: 1, 256>}, {pipeline_mode = #tpu.pipeline_mode<synchronous>, transform_indices = @transform_7, window_bounds = array<i64: 256, 128>}, {pipeline_mode = #tpu.pipeline_mode<synchronous>, transform_indices = @transform_8, window_bounds = array<i64: 1, 128>}, {transform_indices = @transform_9, window_bounds = array<i64: 8, 128>}]} {
    %c0 = arith.constant 0 : index
    %c0_0 = arith.constant 0 : index
    %0 = vector.load %arg1[%c0, %c0_0] : memref<8x8xf32, #tpu.memory_space<vmem>>, vector<8x8xf32>
    %1 = arith.truncf %0 : vector<8x8xf32> to vector<8x8xbf16>
    %c0_1 = arith.constant 0 : index
    %c0_2 = arith.constant 0 : index
    %2 = vector.load %arg2[%c0_1, %c0_2] : memref<8x128xbf16, #tpu.memory_space<vmem>>, vector<8x128xbf16>
    %cst = arith.constant dense<0.000000e+00> : vector<8x128xf32>
    %3 = tpu.matmul %1, %2, %cst {dimension_numbers = #tpu.dot_dimension_numbers<[1], [0], [0], [1], [0, 0, 1, 1], [], []>} : vector<8x8xbf16>, vector<8x128xbf16>, vector<8x128xf32> -> vector<8x128xf32>
    %c0_3 = arith.constant 0 : index
    %c0_4 = arith.constant 0 : index
    %4 = vector.load %arg3[%c0_3, %c0_4] : memref<1x128xf32, #tpu.memory_space<vmem>>, vector<1x128xf32>
    %5 = vector.broadcast %4 : vector<1x128xf32> to vector<8x128xf32>
    %6 = arith.addf %3, %5 : vector<8x128xf32>
    %cst_5 = arith.constant 0.000000e+00 : f32
    %7 = vector.broadcast %cst_5 : f32 to vector<8x128xf32>
    %8 = arith.maximumf %6, %7 : vector<8x128xf32>
    %9 = arith.truncf %8 : vector<8x128xf32> to vector<8x128xbf16>
    %c0_6 = arith.constant 0 : index
    %c0_7 = arith.constant 0 : index
    %10 = vector.load %arg4[%c0_6, %c0_7] : memref<128x256xbf16, #tpu.memory_space<vmem>>, vector<128x256xbf16>
    %cst_8 = arith.constant dense<0.000000e+00> : vector<8x256xf32>
    %11 = tpu.matmul %9, %10, %cst_8 {dimension_numbers = #tpu.dot_dimension_numbers<[1], [0], [0], [1], [0, 0, 1, 1], [], []>} : vector<8x128xbf16>, vector<128x256xbf16>, vector<8x256xf32> -> vector<8x256xf32>
    %c0_9 = arith.constant 0 : index
    %c0_10 = arith.constant 0 : index
    %12 = vector.load %arg5[%c0_9, %c0_10] : memref<1x256xf32, #tpu.memory_space<vmem>>, vector<1x256xf32>
    %13 = vector.broadcast %12 : vector<1x256xf32> to vector<8x256xf32>
    %14 = arith.addf %11, %13 : vector<8x256xf32>
    %cst_11 = arith.constant 0.000000e+00 : f32
    %15 = vector.broadcast %cst_11 : f32 to vector<8x256xf32>
    %16 = arith.maximumf %14, %15 : vector<8x256xf32>
    %17 = arith.truncf %16 : vector<8x256xf32> to vector<8x256xbf16>
    %c0_12 = arith.constant 0 : index
    %c0_13 = arith.constant 0 : index
    %18 = vector.load %arg6[%c0_12, %c0_13] : memref<256x256xbf16, #tpu.memory_space<vmem>>, vector<256x256xbf16>
    %cst_14 = arith.constant dense<0.000000e+00> : vector<8x256xf32>
    %19 = tpu.matmul %17, %18, %cst_14 {dimension_numbers = #tpu.dot_dimension_numbers<[1], [0], [0], [1], [0, 0, 1, 1], [], []>} : vector<8x256xbf16>, vector<256x256xbf16>, vector<8x256xf32> -> vector<8x256xf32>
    %c0_15 = arith.constant 0 : index
    %c0_16 = arith.constant 0 : index
    %20 = vector.load %arg7[%c0_15, %c0_16] : memref<1x256xf32, #tpu.memory_space<vmem>>, vector<1x256xf32>
    %21 = vector.broadcast %20 : vector<1x256xf32> to vector<8x256xf32>
    %22 = arith.addf %19, %21 : vector<8x256xf32>
    %cst_17 = arith.constant 0.000000e+00 : f32
    %23 = vector.broadcast %cst_17 : f32 to vector<8x256xf32>
    %24 = arith.maximumf %22, %23 : vector<8x256xf32>
    %25 = arith.truncf %24 : vector<8x256xf32> to vector<8x256xbf16>
    %c0_18 = arith.constant 0 : index
    %c0_19 = arith.constant 0 : index
    %26 = vector.load %arg8[%c0_18, %c0_19] : memref<256x128xbf16, #tpu.memory_space<vmem>>, vector<256x128xbf16>
    %cst_20 = arith.constant dense<0.000000e+00> : vector<8x128xf32>
    %27 = tpu.matmul %25, %26, %cst_20 {dimension_numbers = #tpu.dot_dimension_numbers<[1], [0], [0], [1], [0, 0, 1, 1], [], []>} : vector<8x256xbf16>, vector<256x128xbf16>, vector<8x128xf32> -> vector<8x128xf32>
    %c0_21 = arith.constant 0 : index
    %c0_22 = arith.constant 0 : index
    %28 = vector.load %arg9[%c0_21, %c0_22] : memref<1x128xf32, #tpu.memory_space<vmem>>, vector<1x128xf32>
    %29 = vector.broadcast %28 : vector<1x128xf32> to vector<8x128xf32>
    %30 = arith.addf %27, %29 : vector<8x128xf32>
    %31 = tpu.iota {dimensions = array<i32: 1>} : vector<1x128xi32>
    %c3_i32 = arith.constant 3 : i32
    %32 = vector.broadcast %c3_i32 : i32 to vector<1x128xi32>
    %33 = arith.cmpi slt, %31, %32 : vector<1x128xi32>
    %34 = arith.negf %30 : vector<8x128xf32>
    %35 = math.exp %34 : vector<8x128xf32>
    %cst_23 = arith.constant 1.000000e+00 : f32
    %36 = vector.broadcast %cst_23 : f32 to vector<8x128xf32>
    %37 = arith.addf %36, %35 : vector<8x128xf32>
    %38 = arith.divf %36, %37 : vector<8x128xf32>
    %39 = vector.shape_cast %33 : vector<1x128xi1> to vector<1x128xi1>
    %40 = vector.broadcast %39 : vector<1x128xi1> to vector<8x128xi1>
    %41 = arith.select %40, %38, %30 : vector<8x128xi1>, vector<8x128xf32>
    %c0_24 = arith.constant 0 : index
    %c0_25 = arith.constant 0 : index
    %42 = vector.load %arg10[%c0_24, %c0_25] : memref<8x128xf32, #tpu.memory_space<vmem>>, vector<8x128xf32>
    tpu.vector_store %arg10[%c0_24, %c0_25], %41 {strides = array<i32>} : memref<8x128xf32, #tpu.memory_space<vmem>>, vector<8x128xf32>,
    return
  }
  func.func @transform_0(%arg0: i32) -> (i32, i32) {
    %c0_i32 = arith.constant 0 : i32
    %c0_i32_0 = arith.constant 0 : i32
    return %arg0, %c0_i32 : i32, i32
  }
  func.func @transform_1(%arg0: i32) -> (i32, i32) {
    %c0_i32 = arith.constant 0 : i32
    %c0_i32_0 = arith.constant 0 : i32
    %c0_i32_1 = arith.constant 0 : i32
    return %c0_i32, %c0_i32_0 : i32, i32
  }
  func.func @transform_2(%arg0: i32) -> (i32, i32) {
    %c0_i32 = arith.constant 0 : i32
    %c0_i32_0 = arith.constant 0 : i32
    %c0_i32_1 = arith.constant 0 : i32
    return %c0_i32, %c0_i32_0 : i32, i32
  }
  func.func @transform_3(%arg0: i32) -> (i32, i32) {
    %c0_i32 = arith.constant 0 : i32
    %c0_i32_0 = arith.constant 0 : i32
    %c0_i32_1 = arith.constant 0 : i32
    return %c0_i32, %c0_i32_0 : i32, i32
  }
  func.func @transform_4(%arg0: i32) -> (i32, i32) {
    %c0_i32 = arith.constant 0 : i32
    %c0_i32_0 = arith.constant 0 : i32
    %c0_i32_1 = arith.constant 0 : i32
    return %c0_i32, %c0_i32_0 : i32, i32
  }
  func.func @transform_5(%arg0: i32) -> (i32, i32) {
    %c0_i32 = arith.constant 0 : i32
    %c0_i32_0 = arith.constant 0 : i32
    %c0_i32_1 = arith.constant 0 : i32
    return %c0_i32, %c0_i32_0 : i32, i32
  }
  func.func @transform_6(%arg0: i32) -> (i32, i32) {
    %c0_i32 = arith.constant 0 : i32
    %c0_i32_0 = arith.constant 0 : i32
    %c0_i32_1 = arith.constant 0 : i32
    return %c0_i32, %c0_i32_0 : i32, i32
  }
  func.func @transform_7(%arg0: i32) -> (i32, i32) {
    %c0_i32 = arith.constant 0 : i32
    %c0_i32_0 = arith.constant 0 : i32
    %c0_i32_1 = arith.constant 0 : i32
    return %c0_i32, %c0_i32_0 : i32, i32
  }
  func.func @transform_8(%arg0: i32) -> (i32, i32) {
    %c0_i32 = arith.constant 0 : i32
    %c0_i32_0 = arith.constant 0 : i32
    %c0_i32_1 = arith.constant 0 : i32
    return %c0_i32, %c0_i32_0 : i32, i32
  }
  func.func @transform_9(%arg0: i32) -> (i32, i32) {
    %c0_i32 = arith.constant 0 : i32
    %c0_i32_0 = arith.constant 0 : i32
    return %arg0, %c0_i32 : i32, i32
  }
}

module attributes {stable_mosaic.version = 11 : i64} {
  func.func @mlp_kernel(%arg0: i32, %arg1: memref<8x8xf32, #tpu.memory_space<vmem>>, %arg2: memref<8x128xbf16, #tpu.memory_space<vmem>>, %arg3: memref<1x128xf32, #tpu.memory_space<vmem>>, %arg4: memref<128x256xbf16, #tpu.memory_space<vmem>>, %arg5: memref<1x256xf32, #tpu.memory_space<vmem>>, %arg6: memref<256x256xbf16, #tpu.memory_space<vmem>>, %arg7: memref<1x256xf32, #tpu.memory_space<vmem>>, %arg8: memref<256x128xbf16, #tpu.memory_space<vmem>>, %arg9: memref<1x128xf32, #tpu.memory_space<vmem>>, %arg10: memref<8x128xf32, #tpu.memory_space<vmem>>) attributes {dimension_semantics = [#tpu.dimension_semantics<parallel>], iteration_bounds = array<i64: 1>, scalar_prefetch = 0 : i64, scratch_operands = 0 : i64, tpu.core_type = #tpu.core_type<tc>, window_params = [{transform_indices = @transform_0, window_bounds = array<i64: 8, 8>}, {pipeline_mode = #tpu.pipeline_mode<synchronous>, transform_indices = @transform_1, window_bounds = array<i64: 8, 128>}, {pipeline_mode = #tpu.pipeline_mode<synchronous>, transform_indices = @transform_2, window_bounds = array<i64: 1, 128>}, {pipeline_mode = #tpu.pipeline_mode<synchronous>, transform_indices = @transform_3, window_bounds = array<i64: 128, 256>}, {pipeline_mode = #tpu.pipeline_mode<synchronous>, transform_indices = @transform_4, window_bounds = array<i64: 1, 256>}, {pipeline_mode = #tpu.pipeline_mode<synchronous>, transform_indices = @transform_5, window_bounds = array<i64: 256, 256>}, {pipeline_mode = #tpu.pipeline_mode<synchronous>, transform_indices = @transform_6, window_bounds = array<i64: 1, 256>}, {pipeline_mode = #tpu.pipeline_mode<synchronous>, transform_indices = @transform_7, window_bounds = array<i64: 256, 128>}, {pipeline_mode = #tpu.pipeline_mode<synchronous>, transform_indices = @transform_8, window_bounds = array<i64: 1, 128>}, {transform_indices = @transform_9, window_bounds = array<i64: 8, 128>}]} {
    %c0 = arith.constant 0 : index
    %c0_0 = arith.constant 0 : index
    %0 = vector.load %arg1[%c0, %c0_0] : memref<8x8xf32, #tpu.memory_space<vmem>>, vector<8x8xf32>
    %1 = arith.truncf %0 : vector<8x8xf32> to vector<8x8xbf16>
    %c0_1 = arith.constant 0 : index
    %c0_2 = arith.constant 0 : index
    %2 = vector.load %arg2[%c0_1, %c0_2] : memref<8x128xbf16, #tpu.memory_space<vmem>>, vector<8x128xbf16>
    %cst = arith.constant dense<0.000000e+00> : vector<8x128xf32>
    %3 = tpu.matmul %1, %2, %cst {dimension_numbers = #tpu.dot_dimension_numbers<[1], [0], [0], [1], [0, 0, 1, 1], [], []>} : vector<8x8xbf16>, vector<8x128xbf16>, vector<8x128xf32> -> vector<8x128xf32>
    %c0_3 = arith.constant 0 : index
    %c0_4 = arith.constant 0 : index
    %4 = vector.load %arg3[%c0_3, %c0_4] : memref<1x128xf32, #tpu.memory_space<vmem>>, vector<1x128xf32>
    %5 = vector.broadcast %4 : vector<1x128xf32> to vector<8x128xf32>
    %6 = arith.addf %3, %5 : vector<8x128xf32>
    %cst_5 = arith.constant 0.000000e+00 : f32
    %7 = vector.broadcast %cst_5 : f32 to vector<8x128xf32>
    %8 = arith.maximumf %6, %7 : vector<8x128xf32>
    %9 = arith.truncf %8 : vector<8x128xf32> to vector<8x128xbf16>
    %c0_6 = arith.constant 0 : index
    %c0_7 = arith.constant 0 : index
    %10 = vector.load %arg4[%c0_6, %c0_7] : memref<128x256xbf16, #tpu.memory_space<vmem>>, vector<128x256xbf16>
    %cst_8 = arith.constant dense<0.000000e+00> : vector<8x256xf32>
    %11 = tpu.matmul %9, %10, %cst_8 {dimension_numbers = #tpu.dot_dimension_numbers<[1], [0], [0], [1], [0, 0, 1, 1], [], []>} : vector<8x128xbf16>, vector<128x256xbf16>, vector<8x256xf32> -> vector<8x256xf32>
    %c0_9 = arith.constant 0 : index
    %c0_10 = arith.constant 0 : index
    %12 = vector.load %arg5[%c0_9, %c0_10] : memref<1x256xf32, #tpu.memory_space<vmem>>, vector<1x256xf32>
    %13 = vector.broadcast %12 : vector<1x256xf32> to vector<8x256xf32>
    %14 = arith.addf %11, %13 : vector<8x256xf32>
    %cst_11 = arith.constant 0.000000e+00 : f32
    %15 = vector.broadcast %cst_11 : f32 to vector<8x256xf32>
    %16 = arith.maximumf %14, %15 : vector<8x256xf32>
    %17 = arith.truncf %16 : vector<8x256xf32> to vector<8x256xbf16>
    %c0_12 = arith.constant 0 : index
    %c0_13 = arith.constant 0 : index
    %18 = vector.load %arg6[%c0_12, %c0_13] : memref<256x256xbf16, #tpu.memory_space<vmem>>, vector<256x256xbf16>
    %cst_14 = arith.constant dense<0.000000e+00> : vector<8x256xf32>
    %19 = tpu.matmul %17, %18, %cst_14 {dimension_numbers = #tpu.dot_dimension_numbers<[1], [0], [0], [1], [0, 0, 1, 1], [], []>} : vector<8x256xbf16>, vector<256x256xbf16>, vector<8x256xf32> -> vector<8x256xf32>
    %c0_15 = arith.constant 0 : index
    %c0_16 = arith.constant 0 : index
    %20 = vector.load %arg7[%c0_15, %c0_16] : memref<1x256xf32, #tpu.memory_space<vmem>>, vector<1x256xf32>
    %21 = vector.broadcast %20 : vector<1x256xf32> to vector<8x256xf32>
    %22 = arith.addf %19, %21 : vector<8x256xf32>
    %cst_17 = arith.constant 0.000000e+00 : f32
    %23 = vector.broadcast %cst_17 : f32 to vector<8x256xf32>
    %24 = arith.maximumf %22, %23 : vector<8x256xf32>
    %25 = arith.truncf %24 : vector<8x256xf32> to vector<8x256xbf16>
    %c0_18 = arith.constant 0 : index
    %c0_19 = arith.constant 0 : index
    %26 = vector.load %arg8[%c0_18, %c0_19] : memref<256x128xbf16, #tpu.memory_space<vmem>>, vector<256x128xbf16>
    %cst_20 = arith.constant dense<0.000000e+00> : vector<8x128xf32>
    %27 = tpu.matmul %25, %26, %cst_20 {dimension_numbers = #tpu.dot_dimension_numbers<[1], [0], [0], [1], [0, 0, 1, 1], [], []>} : vector<8x256xbf16>, vector<256x128xbf16>, vector<8x128xf32> -> vector<8x128xf32>
    %c0_21 = arith.constant 0 : index
    %c0_22 = arith.constant 0 : index
    %28 = vector.load %arg9[%c0_21, %c0_22] : memref<1x128xf32, #tpu.memory_space<vmem>>, vector<1x128xf32>
    %29 = vector.broadcast %28 : vector<1x128xf32> to vector<8x128xf32>
    %30 = arith.addf %27, %29 : vector<8x128xf32>
    %31 = tpu.iota {dimensions = array<i32: 1>} : vector<1x128xi32>
    %c3_i32 = arith.constant 3 : i32
    %32 = vector.broadcast %c3_i32 : i32 to vector<1x128xi32>
    %33 = arith.cmpi slt, %31, %32 : vector<1x128xi32>
    %34 = arith.negf %30 : vector<8x128xf32>
    %35 = math.exp %34 : vector<8x128xf32>
    %cst_23 = arith.constant 1.000000e+00 : f32
    %36 = vector.broadcast %cst_23 : f32 to vector<8x128xf32>
    %37 = arith.addf %36, %35 : vector<8x128xf32>
    %38 = arith.divf %36, %37 : vector<8x128xf32>
    %39 = vector.shape_cast %33 : vector<1x128xi1> to vector<1x128xi1>
    %40 = vector.broadcast %39 : vector<1x128xi1> to vector<8x128xi1>
    %41 = arith.select %40, %38, %30 : vector<8x128xi1>, vector<8x128xf32>
    %c0_24 = arith.constant 0 : index
    %c0_25 = arith.constant 0 : index
    %42 = vector.load %arg10[%c0_24, %c0_25] : memref<8x128xf32, #tpu.memory_space<vmem>>, vector<8x128xf32>
    tpu.vector_store %arg10[%c0_24, %c0_25], %41 {strides = array<i32>} : memref<8x128xf32, #tpu.memory_space<vmem>>, vector<8x128xf32>,
    return
  }
  func.func @transform_0(%arg0: i32) -> (i32, i32) {
    %c0_i32 = arith.constant 0 : i32
    %c0_i32_0 = arith.constant 0 : i32
    return %arg0, %c0_i32 : i32, i32
  }
  func.func @transform_1(%arg0: i32) -> (i32, i32) {
    %c0_i32 = arith.constant 0 : i32
    %c0_i32_0 = arith.constant 0 : i32
    %c0_i32_1 = arith.constant 0 : i32
    return %c0_i32, %c0_i32_0 : i32, i32
  }
  func.func @transform_2(%arg0: i32) -> (i32, i32) {
    %c0_i32 = arith.constant 0 : i32
    %c0_i32_0 = arith.constant 0 : i32
    %c0_i32_1 = arith.constant 0 : i32
    return %c0_i32, %c0_i32_0 : i32, i32
  }
  func.func @transform_3(%arg0: i32) -> (i32, i32) {
    %c0_i32 = arith.constant 0 : i32
    %c0_i32_0 = arith.constant 0 : i32
    %c0_i32_1 = arith.constant 0 : i32
    return %c0_i32, %c0_i32_0 : i32, i32
  }
  func.func @transform_4(%arg0: i32) -> (i32, i32) {
    %c0_i32 = arith.constant 0 : i32
    %c0_i32_0 = arith.constant 0 : i32
    %c0_i32_1 = arith.constant 0 : i32
    return %c0_i32, %c0_i32_0 : i32, i32
  }
  func.func @transform_5(%arg0: i32) -> (i32, i32) {
    %c0_i32 = arith.constant 0 : i32
    %c0_i32_0 = arith.constant 0 : i32
    %c0_i32_1 = arith.constant 0 : i32
    return %c0_i32, %c0_i32_0 : i32, i32
  }
  func.func @transform_6(%arg0: i32) -> (i32, i32) {
    %c0_i32 = arith.constant 0 : i32
    %c0_i32_0 = arith.constant 0 : i32
    %c0_i32_1 = arith.constant 0 : i32
    return %c0_i32, %c0_i32_0 : i32, i32
  }
  func.func @transform_7(%arg0: i32) -> (i32, i32) {
    %c0_i32 = arith.constant 0 : i32
    %c0_i32_0 = arith.constant 0 : i32
    %c0_i32_1 = arith.constant 0 : i32
    return %c0_i32, %c0_i32_0 : i32, i32
  }
  func.func @transform_8(%arg0: i32) -> (i32, i32) {
    %c0_i32 = arith.constant 0 : i32
    %c0_i32_0 = arith.constant 0 : i32
    %c0_i32_1 = arith.constant 0 : i32
    return %c0_i32, %c0_i32_0 : i32, i32
  }
  func.func @transform_9(%arg0: i32) -> (i32, i32) {
    %c0_i32 = arith.constant 0 : i32
    %c0_i32_0 = arith.constant 0 : i32
    return %arg0, %c0_i32 : i32, i32
  }
}

</mosaic_0001>

<bundles_post_ra>
// kernel: tpu_custom_call.1
= control target key start
LH: loop header
LB: loop body
LE: loop exit
PB: predicated region body
PF: predicated region fallthrough
CT: control target
= control target key end

     0   :  { %14 = vsyncpa [#allocation3], 0  ;;  %s1350_s0 = inlined_call_operand.hbm [shape: f32[8,8], index: 0, kind: input, shape index: {}]   ;;  %s1351_s1 = inlined_call_operand.hbm [shape: bf16[8,128], index: 1, kind: input, shape index: {}]   ;;  %s1352_s2 = inlined_call_operand.hbm [shape: f32[1,128], index: 2, kind: input, shape index: {}]   ;;  %s1353_s3 = inlined_call_operand.hbm [shape: bf16[128,256], index: 3, kind: input, shape index: {}]   ;;  %s1354_s4 = inlined_call_operand.vmem [shape: f32[1,256], index: 4, kind: input, shape index: {}]   ;;  %s1355_s5 = inlined_call_operand.hbm [shape: bf16[256,256], index: 5, kind: input, shape index: {}]   ;;  %s1356_s6 = inlined_call_operand.vmem [shape: f32[1,256], index: 6, kind: input, shape index: {}]   ;;  %s1357_s7 = inlined_call_operand.hbm [shape: bf16[256,128], index: 7, kind: input, shape index: {}]   ;;  %s1358_s8 = inlined_call_operand.vmem [shape: f32[1,128], index: 8, kind: input, shape index: {}]   ;;  %s1359_s9 = inlined_call_operand.hbm [shape: f32[8,128], index: 9, kind: output, shape index: {}]  }
   0x1   :  { %15 = vsyncpa [#allocation6], 0 }
   0x2   :  { %16 = vsyncpa [#allocation9], 0 }
   0x3   :  { %17 = vsyncpa [#allocation12], 0  ;;  %s35_s11 = sshll.u32 %s1351_s1, 4  ;;  %s36_s11 = int_to_ptr.hbm [resolvable:$true] %s35_s11 }
   0x4   :  { %18 = vsyncpa [#allocation4], 0  ;;  %s1259_s12 = smov [#allocation5]   ;;  %s56_s16 = sshll.u32 %s1353_s3, 4  ;;  %s57_s16 = int_to_ptr.hbm [resolvable:$true] %s56_s16 }
   0x5   :  { %s37_s13 = sshll.u32 %s1259_s12, 4  ;;  %s1260_s17 = smov [#allocation8]   ;;  %s38_s13 = int_to_ptr.vmem [resolvable:$true] %s37_s13 }
   0x6   :  { %40 = dma.hbm_to_vmem [thread:$0]  %s36_s11, 64, %s38_s13, [#allocation6]  }
   0x7   :  { %s58_s18 = sshll.u32 %s1260_s17, 4  ;;  %s1261_s19 = smov 128   ;;  %s59_s18 = int_to_ptr.vmem [resolvable:$true] %s58_s18 }
   0x8   :  { %s1262_s20 = smov 8   ;;  %s24_s1 = sshll.u32 %s1350_s0, 4  ;;  %s25_s1 = int_to_ptr.hbm [resolvable:$true] %s24_s1 }
   0x9   :  { %64 = dma.hbm_to_vmem [thread:$0]  %s57_s16, 2048, %s59_s18, [#allocation9], %s1261_s19, %s1261_s19, %s1262_s20  }
   0xa   :  { %s1263_s23 = smov [#allocation2]   ;;  %s46_s3 = sshll.u32 %s1352_s2, 4  ;;  %s47_s3 = int_to_ptr.hbm [resolvable:$true] %s46_s3 }
   0xb   :  { %s26_s24 = sshll.u32 %s1263_s23, 4  ;;  %s1264_s27 = smov [#allocation7]   ;;  %s27_s24 = int_to_ptr.vmem [resolvable:$true] %s26_s24 }
   0xc   :  { %29 = dma.hbm_to_vmem [thread:$0]  %s25_s1, 128, %s27_s24, [#allocation3]  }
   0xd   :  { %s48_s28 = sshll.u32 %s1264_s27, 4  ;;  %s71_s10 = sshll.u32 %s1355_s5, 4  ;;  %s49_s28 = int_to_ptr.vmem [resolvable:$true] %s48_s28  ;;  %s72_s10 = int_to_ptr.hbm [resolvable:$true] %s71_s10 }
   0xe   :  { %51 = dma.hbm_to_vmem [thread:$0]  %s47_s3, 16, %s49_s28, [#allocation6]  }
   0xf   :  { %s86_s12 = sshll.u32 %s1357_s7, 4  ;;  %s1265_s13 = smov [#allocation10]   ;;  %s87_s12 = int_to_ptr.hbm [resolvable:$true] %s86_s12 }
  0x10   :  { %s73_s14 = sshll.u32 %s1265_s13, 4  ;;  %s1266_s2 = smov [#allocation11]   ;;  %s74_s14 = int_to_ptr.vmem [resolvable:$true] %s73_s14 }
  0x11   :  { %79 = dma.hbm_to_vmem [thread:$0]  %s72_s10, 4096, %s74_s14, [#allocation9], %s1261_s19, %s1261_s19, %s1262_s20  }
  0x12   :  { %s88_s15 = sshll.u32 %s1266_s2, 4  ;;  %s1267_s16 = smov 64   ;;  %s89_s15 = int_to_ptr.vmem [resolvable:$true] %s88_s15 }
  0x13   :  { %s1268_s17 = smov 4  }
  0x14   :  { %94 = dma.hbm_to_vmem [thread:$0]  %s87_s12, 2048, %s89_s15, [#allocation12], %s1267_s16, %s1267_s16, %s1268_s17  }
  0x15   :  { %1249 = dma.done.wait [#allocation3], 128  }
  0x16   :  { %1250 = vsyncadd [#allocation3], 4294967168 }
  0x17   :  { %1251 = dma.done.wait [#allocation6], 80  }
  0x18   :  { %1252 = vsyncadd [#allocation6], 4294967216 }
  0x19   :  { %1253 = dma.done.wait [#allocation9], 6144  }
  0x1a   :  { %1254 = vsyncadd [#allocation9], 4294961152 }
  0x1b   :  { %1255 = dma.done.wait [#allocation12], 2048  }
  0x1c   :  { %1256 = vsyncadd [#allocation12], 4294965248  ;;  %vm133_vm0 = vcmask 1043456   ;;  %v124_v0 = vld [vmem:[#allocation5] sm:$0xf]  ;;  %v122_v1 = vld [vmem:[#allocation2] sm:$0xff] }
  0x1d   :  { %v801_v2 = vld [vmem:[#allocation8 + $0x70] sm:$0xf]  ;;  %v135_v3 = vsel %vm133_vm0, %v124_v0, 0  ;;  %v123_v4 = vpack.c.bf16 %v122_v1, %v122_v1  ;;  %vm129_vm1 = vcmask 64512   ;;  %v1015_v5 = vld [vmem:[#allocation8 + $0x74] sm:$0xf0] }
  0x1e   :  { %v1014_v6 = vld [vmem:[#allocation8 + $0x74] sm:$0xf]  ;;  %144 = vmatpush.bf16.msra.mxu0 %v135_v3  ;;  %v802_v7 = vor.u32 %v1015_v5, %v801_v2  ;;  %v803_v8 = vld [vmem:[#allocation8 + $0x78] sm:$0xf0]  ;;  %v793_v9 = vld [vmem:[#allocation8 + $0x60] sm:$0xf] }
  0x1f   :  { %v1013_v10 = vld [vmem:[#allocation8 + $0x64] sm:$0xf0]  ;;  %v806_v11 = vor.u32 %v1014_v6, %v803_v8  ;;  %v1012_v12 = vld [vmem:[#allocation8 + $0x64] sm:$0xf]  ;;  %v795_v13 = vld [vmem:[#allocation8 + $0x68] sm:$0xf0] }
  0x20   :  { %254 = vmatpush.bf16.msra.mxu1 %v802_v7  ;;  %v794_v14 = vor.u32 %v1013_v10, %v793_v9  ;;  %v798_v15 = vor.u32 %v1012_v12, %v795_v13  ;;  %v785_v16 = vld [vmem:[#allocation8 + $0x50] sm:$0xf]  ;;  %v1011_v17 = vld [vmem:[#allocation8 + $0x54] sm:$0xf0]  ;;  %v1010_v18 = vld [vmem:[#allocation8 + $0x54] sm:$0xf] }
  0x21   :  { %742 = vmatmul.msk.bf16.vlgmr.msra.gmra.mxu0 %vm129_vm1, %v123_v4  ;;  %267 = vmatpush.bf16.msra.mxu2 %v806_v11  ;;  %v787_v19 = vld [vmem:[#allocation8 + $0x58] sm:$0xf0]  ;;  %v786_v20 = vor.u32 %v1011_v17, %v785_v16  ;;  %v777_v21 = vld [vmem:[#allocation8 + $0x40] sm:$0xf]  ;;  %v1009_v23 = vld [vmem:[#allocation8 + $0x44] sm:$0xf0] }
  0x22   :  { %v790_v22 = vor.u32 %v1010_v18, %v787_v19  ;;  %v1008_v24 = vld [vmem:[#allocation8 + $0x44] sm:$0xf]  ;;  %v779_v25 = vld [vmem:[#allocation8 + $0x48] sm:$0xf0]  ;;  %v778_v26 = vor.u32 %v1009_v23, %v777_v21  ;;  %v769_v28 = vld [vmem:[#allocation8 + $0x30] sm:$0xf] }
  0x23   :  { %v782_v27 = vor.u32 %v1008_v24, %v779_v25  ;;  %v1007_v29 = vld [vmem:[#allocation8 + $0x34] sm:$0xf0]  ;;  %v1006_v30 = vld [vmem:[#allocation8 + $0x34] sm:$0xf]  ;;  %v771_v31 = vld [vmem:[#allocation8 + $0x38] sm:$0xf0] }
  0x24   :  { %255 = vmatpush.bf16.msra.mxu1 %v794_v14  ;;  %v770_v32 = vor.u32 %v1007_v29, %v769_v28  ;;  %v774_v33 = vor.u32 %v1006_v30, %v771_v31  ;;  %v761_v34 = vld [vmem:[#allocation8 + $0x20] sm:$0xf]  ;;  %v1005_v35 = vld [vmem:[#allocation8 + $0x24] sm:$0xf0]  ;;  %v1004_v36 = vld [vmem:[#allocation8 + $0x24] sm:$0xf] }
  0x25   :  { %268 = vmatpush.bf16.msra.mxu2 %v798_v15  ;;  %v763_v37 = vld [vmem:[#allocation8 + $0x28] sm:$0xf0]  ;;  %v762_v38 = vor.u32 %v1005_v35, %v761_v34  ;;  %v753_v40 = vld [vmem:[#allocation8 + $0x10] sm:$0xf]  ;;  %v1003_v41 = vld [vmem:[#allocation8 + $0x14] sm:$0xf0] }
  0x26   :  { %v766_v39 = vor.u32 %v1004_v36, %v763_v37  ;;  %v1002_v42 = vld [vmem:[#allocation8 + $0x14] sm:$0xf]  ;;  %v754_v43 = vor.u32 %v1003_v41, %v753_v40  ;;  %v755_v44 = vld [vmem:[#allocation8 + $0x18] sm:$0xf0]  ;;  %v745_v46 = vld [vmem:[#allocation8] sm:$0xf] }
  0x27   :  { %v758_v45 = vor.u32 %v1002_v42, %v755_v44  ;;  %v1001_v47 = vld [vmem:[#allocation8 + $0x4] sm:$0xf0]  ;;  %v1000_v48 = vld [vmem:[#allocation8 + $0x4] sm:$0xf]  ;;  %v747_v50 = vld [vmem:[#allocation8 + $0x8] sm:$0xf0] }
  0x28   :  { %256 = vmatpush.bf16.msra.mxu1 %v786_v20  ;;  %v746_v49 = vor.u32 %v1001_v47, %v745_v46  ;;  %v750_v51 = vor.u32 %v1000_v48, %v747_v50  ;;  %v865_v52 = vld [vmem:[#allocation10 + $0x70] sm:$0xf]  ;;  %v1031_v53 = vld [vmem:[#allocation10 + $0x74] sm:$0xf0]  ;;  %v1030_v54 = vld [vmem:[#allocation10 + $0x74] sm:$0xf] }
  0x29   :  { %269 = vmatpush.bf16.msra.mxu2 %v790_v22  ;;  %v866_v55 = vor.u32 %v1031_v53, %v865_v52  ;;  %v867_v56 = vld [vmem:[#allocation10 + $0x78] sm:$0xf0]  ;;  %v857_v57 = vld [vmem:[#allocation10 + $0x60] sm:$0xf]  ;;  %v1029_v58 = vld [vmem:[#allocation10 + $0x64] sm:$0xf0] }
  0x2a   :  { %v870_v59 = vor.u32 %v1030_v54, %v867_v56  ;;  %v1028_v60 = vld [vmem:[#allocation10 + $0x64] sm:$0xf]  ;;  %v859_v61 = vld [vmem:[#allocation10 + $0x68] sm:$0xf0]  ;;  %v929_v62 = vld [vmem:[#allocation10 + $0xf0] sm:$0xf]  ;;  %v858_v63 = vor.u32 %v1029_v58, %v857_v57 }
  0x2b   :  { %482 = vmatpush.bf16.msra.mxu3 %v866_v55  ;;  %v1047_v0 = vld [vmem:[#allocation10 + $0xf4] sm:$0xf0]  ;;  %v1046_v1 = vld [vmem:[#allocation10 + $0xf4] sm:$0xf]  ;;  %v931_v2 = vld [vmem:[#allocation10 + $0xf8] sm:$0xf0]  ;;  %v862_v3 = vor.u32 %v1028_v60, %v859_v61 }
  0x2c   :  { %257 = vmatpush.bf16.msra.mxu1 %v778_v26  ;;  %v930_v4 = vor.u32 %v1047_v0, %v929_v62  ;;  %v934_v5 = vor.u32 %v1046_v1, %v931_v2  ;;  %v849_v6 = vld [vmem:[#allocation10 + $0x50] sm:$0xf]  ;;  %v1027_v7 = vld [vmem:[#allocation10 + $0x54] sm:$0xf0]  ;;  %v1026_v8 = vld [vmem:[#allocation10 + $0x54] sm:$0xf] }
  0x2d   :  { %270 = vmatpush.bf16.msra.mxu2 %v782_v27  ;;  %v851_v9 = vld [vmem:[#allocation10 + $0x58] sm:$0xf0]  ;;  %v921_v10 = vld [vmem:[#allocation10 + $0xe0] sm:$0xf]  ;;  %v1045_v11 = vld [vmem:[#allocation10 + $0xe4] sm:$0xf0]  ;;  %v850_v15 = vor.u32 %v1027_v7, %v849_v6 }
  0x2e   :  { %495 = vmatpush.bf16.msrb.mxu0 %v930_v4  ;;  %v922_v12 = vor.u32 %v1045_v11, %v921_v10  ;;  %v1044_v13 = vld [vmem:[#allocation10 + $0xe4] sm:$0xf]  ;;  %v923_v14 = vld [vmem:[#allocation10 + $0xe8] sm:$0xf0]  ;;  %v841_v17 = vld [vmem:[#allocation10 + $0x40] sm:$0xf]  ;;  %v854_v19 = vor.u32 %v1026_v8, %v851_v9 }
  0x2f   :  { %483 = vmatpush.bf16.msra.mxu3 %v858_v63  ;;  %v926_v16 = vor.u32 %v1044_v13, %v923_v14  ;;  %v1025_v18 = vld [vmem:[#allocation10 + $0x44] sm:$0xf0]  ;;  %v913_v20 = vld [vmem:[#allocation10 + $0xd0] sm:$0xf]  ;;  %v1043_v21 = vld [vmem:[#allocation10 + $0xd4] sm:$0xf0] }
  0x30   :  { %258 = vmatpush.bf16.msra.mxu1 %v770_v32  ;;  %v1042_v22 = vld [vmem:[#allocation10 + $0xd4] sm:$0xf]  ;;  %v1024_v23 = vld [vmem:[#allocation10 + $0x44] sm:$0xf]  ;;  %v843_v24 = vld [vmem:[#allocation10 + $0x48] sm:$0xf0]  ;;  %v914_v26 = vor.u32 %v1043_v21, %v913_v20  ;;  %v842_v29 = vor.u32 %v1025_v18, %v841_v17 }
  0x31   :  { %271 = vmatpush.bf16.msra.mxu2 %v774_v33  ;;  %v915_v25 = vld [vmem:[#allocation10 + $0xd8] sm:$0xf0]  ;;  %v905_v28 = vld [vmem:[#allocation10 + $0xc0] sm:$0xf]  ;;  %v1041_v30 = vld [vmem:[#allocation10 + $0xc4] sm:$0xf0]  ;;  %v846_v33 = vor.u32 %v1024_v23, %v843_v24 }
  0x32   :  { %496 = vmatpush.bf16.msrb.mxu0 %v922_v12  ;;  %v918_v27 = vor.u32 %v1042_v22, %v915_v25  ;;  %v1040_v31 = vld [vmem:[#allocation10 + $0xc4] sm:$0xf]  ;;  %v907_v32 = vld [vmem:[#allocation10 + $0xc8] sm:$0xf0]  ;;  %v833_v34 = vld [vmem:[#allocation10 + $0x30] sm:$0xf] }
  0x33   :  { %484 = vmatpush.bf16.msra.mxu3 %v850_v15  ;;  %v1023_v35 = vld [vmem:[#allocation10 + $0x34] sm:$0xf0]  ;;  %v1022_v36 = vld [vmem:[#allocation10 + $0x34] sm:$0xf]  ;;  %v835_v37 = vld [vmem:[#allocation10 + $0x38] sm:$0xf0] }
  0x34   :  { %259 = vmatpush.bf16.msra.mxu1 %v762_v38  ;;  %v906_v38 = vor.u32 %v1041_v30, %v905_v28  ;;  %v897_v40 = vld [vmem:[#allocation10 + $0xb0] sm:$0xf]  ;;  %v834_v41 = vor.u32 %v1023_v35, %v833_v34  ;;  %v1039_v42 = vld [vmem:[#allocation10 + $0xb4] sm:$0xf0]  ;;  %v899_v44 = vld [vmem:[#allocation10 + $0xb8] sm:$0xf0] }
  0x35   :  { %272 = vmatpush.bf16.msra.mxu2 %v766_v39  ;;  %v910_v39 = vor.u32 %v1040_v31, %v907_v32  ;;  %v825_v46 = vld [vmem:[#allocation10 + $0x20] sm:$0xf]  ;;  %v1021_v47 = vld [vmem:[#allocation10 + $0x24] sm:$0xf0]  ;;  %v1020_v48 = vld [vmem:[#allocation10 + $0x24] sm:$0xf]  ;;  %v898_v50 = vor.u32 %v1039_v42, %v897_v40 }
  0x36   :  { %497 = vmatpush.bf16.msrb.mxu0 %v914_v26  ;;  %v826_v52 = vor.u32 %v1021_v47, %v825_v46  ;;  %v1075_v54 = vld [vmem:[#allocation7] ss:$0 sm:$0xff]  ;;  %v817_v60 = vld [vmem:[#allocation10 + $0x10] sm:$0xf]  ;;  %v1019_v61 = vld [vmem:[#allocation10 + $0x14] sm:$0xf0] }
  0x37   :  { %485 = vmatpush.bf16.msra.mxu3 %v842_v29  ;;  %v1018_v62 = vld [vmem:[#allocation10 + $0x14] sm:$0xf]  ;;  %v818_v63 = vor.u32 %v1019_v61, %v817_v60  ;;  %v819_v0 = vld [vmem:[#allocation10 + $0x18] sm:$0xf0]  ;;  %v889_v2 = vld [vmem:[#allocation10 + $0xa0] sm:$0xf] }
  0x38   :  { %260 = vmatpush.bf16.msra.mxu1 %v754_v43  ;;  %v1038_v43 = vld [vmem:[#allocation10 + $0xb4] sm:$0xf]  ;;  %v822_v1 = vor.u32 %v1018_v62, %v819_v0  ;;  %v1036_v4 = vld [vmem:[#allocation10 + $0xa4] sm:$0xf]  ;;  %v891_v6 = vld [vmem:[#allocation10 + $0xa8] sm:$0xf0] }
  0x39   :  { %273 = vmatpush.bf16.msra.mxu2 %v758_v45  ;;  %v838_v45 = vor.u32 %v1022_v36, %v835_v37  ;;  %v894_v7 = vor.u32 %v1036_v4, %v891_v6  ;;  %v809_v8 = vld [vmem:[#allocation10] sm:$0xf]  ;;  %v1017_v9 = vld [vmem:[#allocation10 + $0x4] sm:$0xf0]  ;;  %v1016_v10 = vld [vmem:[#allocation10 + $0x4] sm:$0xf] }
  0x3a   :  { %498 = vmatpush.bf16.msrb.mxu0 %v906_v38  ;;  %v810_v11 = vor.u32 %v1017_v9, %v809_v8  ;;  %v811_v12 = vld [vmem:[#allocation10 + $0x8] sm:$0xf0]  ;;  %v881_v14 = vld [vmem:[#allocation10 + $0x90] sm:$0xf]  ;;  %v1035_v15 = vld [vmem:[#allocation10 + $0x94] sm:$0xf0] }
  0x3b   :  { %486 = vmatpush.bf16.msra.mxu3 %v834_v41  ;;  %v814_v13 = vor.u32 %v1016_v10, %v811_v12  ;;  %v1034_v17 = vld [vmem:[#allocation10 + $0x94] sm:$0xf]  ;;  %v883_v18 = vld [vmem:[#allocation10 + $0x98] sm:$0xf0]  ;;  %v873_v20 = vld [vmem:[#allocation10 + $0x80] sm:$0xf] }
  0x3c   :  { %261 = vmatpush.bf16.msra.mxu1 %v746_v49  ;;  %v827_v49 = vld [vmem:[#allocation10 + $0x28] sm:$0xf0]  ;;  %v1033_v21 = vld [vmem:[#allocation10 + $0x84] sm:$0xf0]  ;;  %v1032_v22 = vld [vmem:[#allocation10 + $0x84] sm:$0xf] }
  0x3d   :  { %274 = vmatpush.bf16.msra.mxu2 %v750_v51  ;;  %v902_v51 = vor.u32 %v1038_v43, %v899_v44  ;;  %v830_v53 = vor.u32 %v1020_v48, %v827_v49  ;;  %v874_v23 = vor.u32 %v1033_v21, %v873_v20  ;;  %v875_v24 = vld [vmem:[#allocation10 + $0x88] sm:$0xf0]  ;;  %v1055_v26 = vld [vmem:[#allocation11 + $0x38] sm:$0xff]  ;;  %v1054_v28 = vld [vmem:[#allocation11 + $0x30] sm:$0xff]  ;;  %v696_v21 = vlaneseq  ;;  %s729_s1 = sshll.u32 %s1359_s9, 4  ;;  %s730_s1 = int_to_ptr.hbm [resolvable:$true] %s729_s1 }
  0x3e   :  { %499 = vmatpush.bf16.msrb.mxu0 %v898_v50  ;;  %v878_v25 = vor.u32 %v1032_v22, %v875_v24  ;;  %v1062_v29 = vld [vmem:[#allocation11 + $0x70] sm:$0xff]  ;;  %v1053_v30 = vld [vmem:[#allocation11 + $0x28] sm:$0xff]  ;;  %v1052_v32 = vld [vmem:[#allocation11 + $0x20] sm:$0xff] }
  0x3f   :  { %487 = vmatpush.bf16.msra.mxu3 %v826_v52  ;;  %v1061_v31 = vld [vmem:[#allocation11 + $0x68] sm:$0xff]  ;;  %v1051_v46 = vld [vmem:[#allocation11 + $0x18] sm:$0xff]  ;;  %v1060_v47 = vld [vmem:[#allocation11 + $0x60] sm:$0xff]  ;;  %v697_v24 = vand.u32 127, %v696_v21 }
  0x40   :  { %508 = vmatpush.bf16.msrb.mxu1 %v870_v59  ;;  %v1050_v48 = vld [vmem:[#allocation11 + $0x10] sm:$0xff]  ;;  %v1059_v49 = vld [vmem:[#allocation11 + $0x58] sm:$0xff]  ;;  %v1049_v50 = vld [vmem:[#allocation11 + $0x8] sm:$0xff] }
  0x41   :  { %521 = vmatpush.bf16.msrb.mxu2 %v934_v5  ;;  %v1048_v52 = vld [vmem:[#allocation11] sm:$0xff]  ;;  %v1076_v10 = vld [vmem:[%s1358_s8] ss:$0 sm:$0xff]  ;;  %s1269_s8 = smov [#allocation13]   ;;  %vm698_vm4 = vcmp.lt.s32.totalorder %v697_v24, 3 }
  0x42   :  { %s727_s20 = sshll.u32 %s1269_s8, 4  ;;  %s728_s20 = int_to_ptr.vmem [resolvable:$true] %s727_s20 }
  0x43   :  { %488 = vmatpush.bf16.msra.mxu3 %v818_v63 }
  0x44   :  { %509 = vmatpush.bf16.msrb.mxu1 %v862_v3  ;;  %v1037_v3 = vld [vmem:[#allocation10 + $0xa4] sm:$0xf0] }
  0x45   :  { %522 = vmatpush.bf16.msrb.mxu2 %v926_v16  ;;  %v890_v5 = vor.u32 %v1037_v3, %v889_v2  ;;  %v882_v16 = vor.u32 %v1035_v15, %v881_v14 }
  0x47   :  { %500 = vmatpush.bf16.msrb.mxu0 %v890_v5  ;;  %489 = vmatpush.bf16.msra.mxu3 %v810_v11 }
  0x48   :  { %510 = vmatpush.bf16.msrb.mxu1 %v854_v19  ;;  %v886_v19 = vor.u32 %v1034_v17, %v883_v18 }
  0x49   :  { %523 = vmatpush.bf16.msrb.mxu2 %v918_v27  ;;  %v1063_v27 = vld [vmem:[#allocation11 + $0x78] sm:$0xff] }
  0x4b   :  { %501 = vmatpush.bf16.msrb.mxu0 %v882_v16  ;;  %670 = vmatpush.bf16.msrb.mxu3 %v1055_v26 }
  0x4c   :  { %511 = vmatpush.bf16.msrb.mxu1 %v846_v33  ;;  %v168_v33 = vld [vmem:[%s1354_s4] sm:$0x3] }
  0x4d   :  { %524 = vmatpush.bf16.msrb.mxu2 %v910_v39  ;;  %v170_v34 = vperm.slane %v168_v33, 0  ;;  %v171_v38 = vperm.slane %v168_v33, 1 }
  0x4f   :  { %502 = vmatpush.bf16.msrb.mxu0 %v874_v23  ;;  %671 = vmatpush.bf16.msrb.mxu3 %v1054_v28 }
  0x50   :  { %512 = vmatpush.bf16.msrb.mxu1 %v838_v45 }
  0x51   :  { %525 = vmatpush.bf16.msrb.mxu2 %v902_v51  ;;  %v1058_v51 = vld [vmem:[#allocation11 + $0x50] sm:$0xff] }
  0x53   :  { %683 = vmatpush.bf16.msra.mxu0 %v1063_v27  ;;  %672 = vmatpush.bf16.msrb.mxu3 %v1053_v30 }
  0x54   :  { %513 = vmatpush.bf16.msrb.mxu1 %v830_v53  ;;  %v1057_v53 = vld [vmem:[#allocation11 + $0x48] sm:$0xff] }
  0x55   :  { %526 = vmatpush.bf16.msrb.mxu2 %v894_v7 }
  0x57   :  { %684 = vmatpush.bf16.msra.mxu0 %v1062_v29  ;;  %673 = vmatpush.bf16.msrb.mxu3 %v1052_v32 }
  0x58   :  { %514 = vmatpush.bf16.msrb.mxu1 %v822_v1 }
  0x59   :  { %527 = vmatpush.bf16.msrb.mxu2 %v886_v19 }
  0x5b   :  { %685 = vmatpush.bf16.msra.mxu0 %v1061_v31  ;;  %674 = vmatpush.bf16.msrb.mxu3 %v1051_v46 }
  0x5c   :  { %515 = vmatpush.bf16.msrb.mxu1 %v814_v13 }
  0x5d   :  { %528 = vmatpush.bf16.msrb.mxu2 %v878_v25 }
  0x5f   :  { %686 = vmatpush.bf16.msra.mxu0 %v1060_v47  ;;  %675 = vmatpush.bf16.msrb.mxu3 %v1050_v48 }
  0x63   :  { %687 = vmatpush.bf16.msra.mxu0 %v1059_v49  ;;  %676 = vmatpush.bf16.msrb.mxu3 %v1049_v50 }
  0x67   :  { %688 = vmatpush.bf16.msra.mxu0 %v1058_v51  ;;  %677 = vmatpush.bf16.msrb.mxu3 %v1048_v52 }
  0x6b   :  { %689 = vmatpush.bf16.msra.mxu0 %v1057_v53 }
  0x9e   :  { %v146_v55 = vpop.f32.mrf.mxu0 }
  0x9f   :  { %v147_v56 = vadd.f32 %v1075_v54, %v146_v55  ;;  %v1056_v54 = vld [vmem:[#allocation11 + $0x40] sm:$0xff] }
  0xa0   :  { %690 = vmatpush.bf16.msra.mxu0 %v1056_v54 }
  0xa1   :  { %v150_v57 = vmax.f32 %v147_v56, 0.0  ;;  %v316_v56 = vld [vmem:[%s1356_s6] sm:$0x3] }
  0xa2   :  { %v319_v60 = vperm.slane %v316_v56, 1 }
  0xa3   :  { %v151_v58 = vpack.c.bf16 %v150_v57, %v150_v57  ;;  %v318_v57 = vperm.slane %v316_v56, 0 }
  0xa5   :  { %262 = vmatmul.bf16.vlgmr.msra.gmra.mxu1 %v151_v58  ;;  %275 = vmatmul.bf16.vlgmr.msra.gmra.mxu2 %v151_v58 }
  0xa6   :  { %v148_v59 = vpop.f32.mrf.mxu0 }
 0x122   :  { %v263_v35 = vpop.f32.mrf.mxu1 }
 0x123   :  { %v264_v36 = vadd.f32 %v263_v35, %v170_v34 }
 0x125   :  { %v280_v37 = vmax.f32 %v264_v36, 0.0 }
 0x127   :  { %v282_v39 = vpack.c.bf16 %v280_v37, %v280_v37 }
 0x128   :  { %v276_v40 = vpop.f32.mrf.mxu2 }
 0x129   :  { %v277_v41 = vadd.f32 %v276_v40, %v171_v38  ;;  %490 = vmatmul.bf16.vlgmr.msra.gmra.mxu3 %v282_v39  ;;  %516 = vmatmul.bf16.vlgmr.msrb.gmra.mxu1 %v282_v39 }
 0x12a   :  { %v265_v42 = vpop.f32.mrf.mxu1 }
 0x12b   :  { %v281_v43 = vmax.f32 %v277_v41, 0.0 }
 0x12d   :  { %v283_v44 = vpack.c.bf16 %v281_v43, %v281_v43 }
 0x12f   :  { %503 = vmatmul.bf16.vlgmr.msrb.gmra.mxu0 %v283_v44  ;;  %529 = vmatmul.bf16.vlgmr.msrb.gmra.mxu2 %v283_v44 }
 0x130   :  { %v278_v45 = vpop.f32.mrf.mxu2 }
 0x1a6   :  { %v517_v55 = vpop.f32.mrf.mxu1 }
 0x1a7   :  { %v518_v0 = vadd.f32 %v517_v55, %v319_v60 }
 0x1ac   :  { %v491_v58 = vpop.f32.mrf.mxu3  ;;  %v504_v59 = vpop.f32.mrf.mxu0 }
 0x1ad   :  { %v492_v61 = vadd.f32 %v491_v58, %v318_v57 }
 0x1ae   :  { %v519_v62 = vpop.f32.mrf.mxu1 }
 0x1af   :  { %v505_v63 = vadd.f32 %v504_v59, %v492_v61 }
 0x1b1   :  { %v534_v1 = vmax.f32 %v505_v63, 0.0 }
 0x1b2   :  { %v530_v2 = vpop.f32.mrf.mxu2 }
 0x1b3   :  { %v536_v3 = vpack.c.bf16 %v534_v1, %v534_v1  ;;  %v531_v4 = vadd.f32 %v530_v2, %v518_v0 }
 0x1b4   :  { %v493_v5 = vpop.f32.mrf.mxu3  ;;  %v506_v6 = vpop.f32.mrf.mxu0 }
 0x1b5   :  { %v535_v7 = vmax.f32 %v531_v4, 0.0  ;;  %678 = vmatmul.bf16.vlgmr.msrb.gmra.mxu3 %v536_v3 }
 0x1b7   :  { %v537_v8 = vpack.c.bf16 %v535_v7, %v535_v7 }
 0x1b9   :  { %691 = vmatmul.bf16.vlgmr.msra.gmra.mxu0 %v537_v8 }
 0x1ba   :  { %v532_v9 = vpop.f32.mrf.mxu2 }
 0x236   :  { %v692_v11 = vpop.f32.mrf.mxu0 }
 0x238   :  { %v679_v12 = vpop.f32.mrf.mxu3 }
 0x239   :  { %v680_v13 = vadd.f32 %v1076_v10, %v679_v12 }
 0x23b   :  { %v693_v14 = vadd.f32 %v692_v11, %v680_v13 }
 0x23d   :  { %v999_v15 = vmul.f32 -1.442695, %v693_v14 }
 0x23e   :  { %v694_v16 = vpop.f32.mrf.mxu0 }
 0x23f   :  { %1077 = vpow2.f32 %v999_v15 }
 0x240   :  { %v681_v17 = vpop.f32.mrf.mxu3 }
 0x245   :  { %v1078_v18 = vpop.eup %1077 }
 0x246   :  { %v702_v19 = vadd.f32 1.0, %v1078_v18 }
 0x248   :  { %1079 = vrcp.f32 %v702_v19  ;;  %v714_v25 = vand.u32 2147483648, %v702_v19  ;;  %v712_v27 = vand.u32 2147483647, %v702_v19  ;;  %vm708_vm3 = vweird.f32 %v702_v19 }
 0x24a   :  { %v715_v29 = vor.u32 1.1754944e-38, %v714_v25  ;;  %vm713_vm6 = vcmp.eq.f32.partialorder %v712_v27, 8.507059e+37 }
 0x24e   :  { %v1080_v20 = vpop.eup %1079 }
 0x24f   :  { %v704_v22 = vmul.f32 %v1080_v20, %v702_v19  ;;  %vm709_vm2 = vweird.f32 %v1080_v20 }
 0x250   :  { %vm710_vm5 = vmor %vm708_vm3, %vm709_vm2 }
 0x251   :  { %v705_v23 = vsub.f32 1.0, %v704_v22 }
 0x253   :  { %v706_v26 = vmul.f32 %v1080_v20, %v705_v23 }
 0x255   :  { %v707_v28 = vadd.f32 %v1080_v20, %v706_v26 }
 0x257   :  { %v711_v30 = vsel %vm710_vm5, %v1080_v20, %v707_v28 }
 0x258   :  { %v716_v31 = vsel %vm713_vm6, %v715_v29, %v711_v30 }
 0x259   :  { %v720_v32 = vsel %vm698_vm4, %v716_v31, %v693_v14 }
 0x25a   :  { %721 = vst [vmem:[#allocation13] sm:$0xff] %v720_v32 }
 0x25b   :  { %732 = dma.vmem_to_hbm [thread:$0]  %s728_s20, 128, %s730_s1, [#allocation4]  }
 0x25c   :  { %1257 = dma.done.wait [#allocation4], 128  }
 0x25d   :  { %1258 = vsyncadd [#allocation4], 4294967168 }
 0x25e   :  { %737 = vsyncpa [#allocation3], 1 }
 0x25f   :  { %738 = vsyncpa [#allocation6], 1 }
 0x260   :  { %739 = vsyncpa [#allocation9], 1 }
 0x261   :  { %740 = vsyncpa [#allocation12], 1 }
 0x262   :  { %741 = vsyncpa [#allocation4], 1 }

// kernel: tpu_custom_call.1
= control target key start
LH: loop header
LB: loop body
LE: loop exit
PB: predicated region body
PF: predicated region fallthrough
CT: control target
= control target key end

     0   :  { %14 = vsyncpa [#allocation3], 0  ;;  %s1350_s0 = inlined_call_operand.hbm [shape: f32[8,8], index: 0, kind: input, shape index: {}]   ;;  %s1351_s1 = inlined_call_operand.hbm [shape: bf16[8,128], index: 1, kind: input, shape index: {}]   ;;  %s1352_s2 = inlined_call_operand.hbm [shape: f32[1,128], index: 2, kind: input, shape index: {}]   ;;  %s1353_s3 = inlined_call_operand.hbm [shape: bf16[128,256], index: 3, kind: input, shape index: {}]   ;;  %s1354_s4 = inlined_call_operand.vmem [shape: f32[1,256], index: 4, kind: input, shape index: {}]   ;;  %s1355_s5 = inlined_call_operand.hbm [shape: bf16[256,256], index: 5, kind: input, shape index: {}]   ;;  %s1356_s6 = inlined_call_operand.vmem [shape: f32[1,256], index: 6, kind: input, shape index: {}]   ;;  %s1357_s7 = inlined_call_operand.hbm [shape: bf16[256,128], index: 7, kind: input, shape index: {}]   ;;  %s1358_s8 = inlined_call_operand.vmem [shape: f32[1,128], index: 8, kind: input, shape index: {}]   ;;  %s1359_s9 = inlined_call_operand.hbm [shape: f32[8,128], index: 9, kind: output, shape index: {}]  }
   0x1   :  { %15 = vsyncpa [#allocation6], 0 }
   0x2   :  { %16 = vsyncpa [#allocation9], 0 }
   0x3   :  { %17 = vsyncpa [#allocation12], 0  ;;  %s35_s11 = sshll.u32 %s1351_s1, 4  ;;  %s36_s11 = int_to_ptr.hbm [resolvable:$true] %s35_s11 }
   0x4   :  { %18 = vsyncpa [#allocation4], 0  ;;  %s1259_s12 = smov [#allocation5]   ;;  %s56_s16 = sshll.u32 %s1353_s3, 4  ;;  %s57_s16 = int_to_ptr.hbm [resolvable:$true] %s56_s16 }
   0x5   :  { %s37_s13 = sshll.u32 %s1259_s12, 4  ;;  %s1260_s17 = smov [#allocation8]   ;;  %s38_s13 = int_to_ptr.vmem [resolvable:$true] %s37_s13 }
   0x6   :  { %40 = dma.hbm_to_vmem [thread:$0]  %s36_s11, 64, %s38_s13, [#allocation6]  }
   0x7   :  { %s58_s18 = sshll.u32 %s1260_s17, 4  ;;  %s1261_s19 = smov 128   ;;  %s59_s18 = int_to_ptr.vmem [resolvable:$true] %s58_s18 }
   0x8   :  { %s1262_s20 = smov 8   ;;  %s24_s1 = sshll.u32 %s1350_s0, 4  ;;  %s25_s1 = int_to_ptr.hbm [resolvable:$true] %s24_s1 }
   0x9   :  { %64 = dma.hbm_to_vmem [thread:$0]  %s57_s16, 2048, %s59_s18, [#allocation9], %s1261_s19, %s1261_s19, %s1262_s20  }
   0xa   :  { %s1263_s23 = smov [#allocation2]   ;;  %s46_s3 = sshll.u32 %s1352_s2, 4  ;;  %s47_s3 = int_to_ptr.hbm [resolvable:$true] %s46_s3 }
   0xb   :  { %s26_s24 = sshll.u32 %s1263_s23, 4  ;;  %s1264_s27 = smov [#allocation7]   ;;  %s27_s24 = int_to_ptr.vmem [resolvable:$true] %s26_s24 }
   0xc   :  { %29 = dma.hbm_to_vmem [thread:$0]  %s25_s1, 128, %s27_s24, [#allocation3]  }
   0xd   :  { %s48_s28 = sshll.u32 %s1264_s27, 4  ;;  %s71_s10 = sshll.u32 %s1355_s5, 4  ;;  %s49_s28 = int_to_ptr.vmem [resolvable:$true] %s48_s28  ;;  %s72_s10 = int_to_ptr.hbm [resolvable:$true] %s71_s10 }
   0xe   :  { %51 = dma.hbm_to_vmem [thread:$0]  %s47_s3, 16, %s49_s28, [#allocation6]  }
   0xf   :  { %s86_s12 = sshll.u32 %s1357_s7, 4  ;;  %s1265_s13 = smov [#allocation10]   ;;  %s87_s12 = int_to_ptr.hbm [resolvable:$true] %s86_s12 }
  0x10   :  { %s73_s14 = sshll.u32 %s1265_s13, 4  ;;  %s1266_s2 = smov [#allocation11]   ;;  %s74_s14 = int_to_ptr.vmem [resolvable:$true] %s73_s14 }
  0x11   :  { %79 = dma.hbm_to_vmem [thread:$0]  %s72_s10, 4096, %s74_s14, [#allocation9], %s1261_s19, %s1261_s19, %s1262_s20  }
  0x12   :  { %s88_s15 = sshll.u32 %s1266_s2, 4  ;;  %s1267_s16 = smov 64   ;;  %s89_s15 = int_to_ptr.vmem [resolvable:$true] %s88_s15 }
  0x13   :  { %s1268_s17 = smov 4  }
  0x14   :  { %94 = dma.hbm_to_vmem [thread:$0]  %s87_s12, 2048, %s89_s15, [#allocation12], %s1267_s16, %s1267_s16, %s1268_s17  }
  0x15   :  { %1249 = dma.done.wait [#allocation3], 128  }
  0x16   :  { %1250 = vsyncadd [#allocation3], 4294967168 }
  0x17   :  { %1251 = dma.done.wait [#allocation6], 80  }
  0x18   :  { %1252 = vsyncadd [#allocation6], 4294967216 }
  0x19   :  { %1253 = dma.done.wait [#allocation9], 6144  }
  0x1a   :  { %1254 = vsyncadd [#allocation9], 4294961152 }
  0x1b   :  { %1255 = dma.done.wait [#allocation12], 2048  }
  0x1c   :  { %1256 = vsyncadd [#allocation12], 4294965248  ;;  %vm133_vm0 = vcmask 1043456   ;;  %v124_v0 = vld [vmem:[#allocation5] sm:$0xf]  ;;  %v122_v1 = vld [vmem:[#allocation2] sm:$0xff] }
  0x1d   :  { %v801_v2 = vld [vmem:[#allocation8 + $0x70] sm:$0xf]  ;;  %v135_v3 = vsel %vm133_vm0, %v124_v0, 0  ;;  %v123_v4 = vpack.c.bf16 %v122_v1, %v122_v1  ;;  %vm129_vm1 = vcmask 64512   ;;  %v1015_v5 = vld [vmem:[#allocation8 + $0x74] sm:$0xf0] }
  0x1e   :  { %v1014_v6 = vld [vmem:[#allocation8 + $0x74] sm:$0xf]  ;;  %144 = vmatpush.bf16.msra.mxu0 %v135_v3  ;;  %v802_v7 = vor.u32 %v1015_v5, %v801_v2  ;;  %v803_v8 = vld [vmem:[#allocation8 + $0x78] sm:$0xf0]  ;;  %v793_v9 = vld [vmem:[#allocation8 + $0x60] sm:$0xf] }
  0x1f   :  { %v1013_v10 = vld [vmem:[#allocation8 + $0x64] sm:$0xf0]  ;;  %v806_v11 = vor.u32 %v1014_v6, %v803_v8  ;;  %v1012_v12 = vld [vmem:[#allocation8 + $0x64] sm:$0xf]  ;;  %v795_v13 = vld [vmem:[#allocation8 + $0x68] sm:$0xf0] }
  0x20   :  { %254 = vmatpush.bf16.msra.mxu1 %v802_v7  ;;  %v794_v14 = vor.u32 %v1013_v10, %v793_v9  ;;  %v798_v15 = vor.u32 %v1012_v12, %v795_v13  ;;  %v785_v16 = vld [vmem:[#allocation8 + $0x50] sm:$0xf]  ;;  %v1011_v17 = vld [vmem:[#allocation8 + $0x54] sm:$0xf0]  ;;  %v1010_v18 = vld [vmem:[#allocation8 + $0x54] sm:$0xf] }
  0x21   :  { %742 = vmatmul.msk.bf16.vlgmr.msra.gmra.mxu0 %vm129_vm1, %v123_v4  ;;  %267 = vmatpush.bf16.msra.mxu2 %v806_v11  ;;  %v787_v19 = vld [vmem:[#allocation8 + $0x58] sm:$0xf0]  ;;  %v786_v20 = vor.u32 %v1011_v17, %v785_v16  ;;  %v777_v21 = vld [vmem:[#allocation8 + $0x40] sm:$0xf]  ;;  %v1009_v23 = vld [vmem:[#allocation8 + $0x44] sm:$0xf0] }
  0x22   :  { %v790_v22 = vor.u32 %v1010_v18, %v787_v19  ;;  %v1008_v24 = vld [vmem:[#allocation8 + $0x44] sm:$0xf]  ;;  %v779_v25 = vld [vmem:[#allocation8 + $0x48] sm:$0xf0]  ;;  %v778_v26 = vor.u32 %v1009_v23, %v777_v21  ;;  %v769_v28 = vld [vmem:[#allocation8 + $0x30] sm:$0xf] }
  0x23   :  { %v782_v27 = vor.u32 %v1008_v24, %v779_v25  ;;  %v1007_v29 = vld [vmem:[#allocation8 + $0x34] sm:$0xf0]  ;;  %v1006_v30 = vld [vmem:[#allocation8 + $0x34] sm:$0xf]  ;;  %v771_v31 = vld [vmem:[#allocation8 + $0x38] sm:$0xf0] }
  0x24   :  { %255 = vmatpush.bf16.msra.mxu1 %v794_v14  ;;  %v770_v32 = vor.u32 %v1007_v29, %v769_v28  ;;  %v774_v33 = vor.u32 %v1006_v30, %v771_v31  ;;  %v761_v34 = vld [vmem:[#allocation8 + $0x20] sm:$0xf]  ;;  %v1005_v35 = vld [vmem:[#allocation8 + $0x24] sm:$0xf0]  ;;  %v1004_v36 = vld [vmem:[#allocation8 + $0x24] sm:$0xf] }
  0x25   :  { %268 = vmatpush.bf16.msra.mxu2 %v798_v15  ;;  %v763_v37 = vld [vmem:[#allocation8 + $0x28] sm:$0xf0]  ;;  %v762_v38 = vor.u32 %v1005_v35, %v761_v34  ;;  %v753_v40 = vld [vmem:[#allocation8 + $0x10] sm:$0xf]  ;;  %v1003_v41 = vld [vmem:[#allocation8 + $0x14] sm:$0xf0] }
  0x26   :  { %v766_v39 = vor.u32 %v1004_v36, %v763_v37  ;;  %v1002_v42 = vld [vmem:[#allocation8 + $0x14] sm:$0xf]  ;;  %v754_v43 = vor.u32 %v1003_v41, %v753_v40  ;;  %v755_v44 = vld [vmem:[#allocation8 + $0x18] sm:$0xf0]  ;;  %v745_v46 = vld [vmem:[#allocation8] sm:$0xf] }
  0x27   :  { %v758_v45 = vor.u32 %v1002_v42, %v755_v44  ;;  %v1001_v47 = vld [vmem:[#allocation8 + $0x4] sm:$0xf0]  ;;  %v1000_v48 = vld [vmem:[#allocation8 + $0x4] sm:$0xf]  ;;  %v747_v50 = vld [vmem:[#allocation8 + $0x8] sm:$0xf0] }
  0x28   :  { %256 = vmatpush.bf16.msra.mxu1 %v786_v20  ;;  %v746_v49 = vor.u32 %v1001_v47, %v745_v46  ;;  %v750_v51 = vor.u32 %v1000_v48, %v747_v50  ;;  %v865_v52 = vld [vmem:[#allocation10 + $0x70] sm:$0xf]  ;;  %v1031_v53 = vld [vmem:[#allocation10 + $0x74] sm:$0xf0]  ;;  %v1030_v54 = vld [vmem:[#allocation10 + $0x74] sm:$0xf] }
  0x29   :  { %269 = vmatpush.bf16.msra.mxu2 %v790_v22  ;;  %v866_v55 = vor.u32 %v1031_v53, %v865_v52  ;;  %v867_v56 = vld [vmem:[#allocation10 + $0x78] sm:$0xf0]  ;;  %v857_v57 = vld [vmem:[#allocation10 + $0x60] sm:$0xf]  ;;  %v1029_v58 = vld [vmem:[#allocation10 + $0x64] sm:$0xf0] }
  0x2a   :  { %v870_v59 = vor.u32 %v1030_v54, %v867_v56  ;;  %v1028_v60 = vld [vmem:[#allocation10 + $0x64] sm:$0xf]  ;;  %v859_v61 = vld [vmem:[#allocation10 + $0x68] sm:$0xf0]  ;;  %v929_v62 = vld [vmem:[#allocation10 + $0xf0] sm:$0xf]  ;;  %v858_v63 = vor.u32 %v1029_v58, %v857_v57 }
  0x2b   :  { %482 = vmatpush.bf16.msra.mxu3 %v866_v55  ;;  %v1047_v0 = vld [vmem:[#allocation10 + $0xf4] sm:$0xf0]  ;;  %v1046_v1 = vld [vmem:[#allocation10 + $0xf4] sm:$0xf]  ;;  %v931_v2 = vld [vmem:[#allocation10 + $0xf8] sm:$0xf0]  ;;  %v862_v3 = vor.u32 %v1028_v60, %v859_v61 }
  0x2c   :  { %257 = vmatpush.bf16.msra.mxu1 %v778_v26  ;;  %v930_v4 = vor.u32 %v1047_v0, %v929_v62  ;;  %v934_v5 = vor.u32 %v1046_v1, %v931_v2  ;;  %v849_v6 = vld [vmem:[#allocation10 + $0x50] sm:$0xf]  ;;  %v1027_v7 = vld [vmem:[#allocation10 + $0x54] sm:$0xf0]  ;;  %v1026_v8 = vld [vmem:[#allocation10 + $0x54] sm:$0xf] }
  0x2d   :  { %270 = vmatpush.bf16.msra.mxu2 %v782_v27  ;;  %v851_v9 = vld [vmem:[#allocation10 + $0x58] sm:$0xf0]  ;;  %v921_v10 = vld [vmem:[#allocation10 + $0xe0] sm:$0xf]  ;;  %v1045_v11 = vld [vmem:[#allocation10 + $0xe4] sm:$0xf0]  ;;  %v850_v15 = vor.u32 %v1027_v7, %v849_v6 }
  0x2e   :  { %495 = vmatpush.bf16.msrb.mxu0 %v930_v4  ;;  %v922_v12 = vor.u32 %v1045_v11, %v921_v10  ;;  %v1044_v13 = vld [vmem:[#allocation10 + $0xe4] sm:$0xf]  ;;  %v923_v14 = vld [vmem:[#allocation10 + $0xe8] sm:$0xf0]  ;;  %v841_v17 = vld [vmem:[#allocation10 + $0x40] sm:$0xf]  ;;  %v854_v19 = vor.u32 %v1026_v8, %v851_v9 }
  0x2f   :  { %483 = vmatpush.bf16.msra.mxu3 %v858_v63  ;;  %v926_v16 = vor.u32 %v1044_v13, %v923_v14  ;;  %v1025_v18 = vld [vmem:[#allocation10 + $0x44] sm:$0xf0]  ;;  %v913_v20 = vld [vmem:[#allocation10 + $0xd0] sm:$0xf]  ;;  %v1043_v21 = vld [vmem:[#allocation10 + $0xd4] sm:$0xf0] }
  0x30   :  { %258 = vmatpush.bf16.msra.mxu1 %v770_v32  ;;  %v1042_v22 = vld [vmem:[#allocation10 + $0xd4] sm:$0xf]  ;;  %v1024_v23 = vld [vmem:[#allocation10 + $0x44] sm:$0xf]  ;;  %v843_v24 = vld [vmem:[#allocation10 + $0x48] sm:$0xf0]  ;;  %v914_v26 = vor.u32 %v1043_v21, %v913_v20  ;;  %v842_v29 = vor.u32 %v1025_v18, %v841_v17 }
  0x31   :  { %271 = vmatpush.bf16.msra.mxu2 %v774_v33  ;;  %v915_v25 = vld [vmem:[#allocation10 + $0xd8] sm:$0xf0]  ;;  %v905_v28 = vld [vmem:[#allocation10 + $0xc0] sm:$0xf]  ;;  %v1041_v30 = vld [vmem:[#allocation10 + $0xc4] sm:$0xf0]  ;;  %v846_v33 = vor.u32 %v1024_v23, %v843_v24 }
  0x32   :  { %496 = vmatpush.bf16.msrb.mxu0 %v922_v12  ;;  %v918_v27 = vor.u32 %v1042_v22, %v915_v25  ;;  %v1040_v31 = vld [vmem:[#allocation10 + $0xc4] sm:$0xf]  ;;  %v907_v32 = vld [vmem:[#allocation10 + $0xc8] sm:$0xf0]  ;;  %v833_v34 = vld [vmem:[#allocation10 + $0x30] sm:$0xf] }
  0x33   :  { %484 = vmatpush.bf16.msra.mxu3 %v850_v15  ;;  %v1023_v35 = vld [vmem:[#allocation10 + $0x34] sm:$0xf0]  ;;  %v1022_v36 = vld [vmem:[#allocation10 + $0x34] sm:$0xf]  ;;  %v835_v37 = vld [vmem:[#allocation10 + $0x38] sm:$0xf0] }
  0x34   :  { %259 = vmatpush.bf16.msra.mxu1 %v762_v38  ;;  %v906_v38 = vor.u32 %v1041_v30, %v905_v28  ;;  %v897_v40 = vld [vmem:[#allocation10 + $0xb0] sm:$0xf]  ;;  %v834_v41 = vor.u32 %v1023_v35, %v833_v34  ;;  %v1039_v42 = vld [vmem:[#allocation10 + $0xb4] sm:$0xf0]  ;;  %v899_v44 = vld [vmem:[#allocation10 + $0xb8] sm:$0xf0] }
  0x35   :  { %272 = vmatpush.bf16.msra.mxu2 %v766_v39  ;;  %v910_v39 = vor.u32 %v1040_v31, %v907_v32  ;;  %v825_v46 = vld [vmem:[#allocation10 + $0x20] sm:$0xf]  ;;  %v1021_v47 = vld [vmem:[#allocation10 + $0x24] sm:$0xf0]  ;;  %v1020_v48 = vld [vmem:[#allocation10 + $0x24] sm:$0xf]  ;;  %v898_v50 = vor.u32 %v1039_v42, %v897_v40 }
  0x36   :  { %497 = vmatpush.bf16.msrb.mxu0 %v914_v26  ;;  %v826_v52 = vor.u32 %v1021_v47, %v825_v46  ;;  %v1075_v54 = vld [vmem:[#allocation7] ss:$0 sm:$0xff]  ;;  %v817_v60 = vld [vmem:[#allocation10 + $0x10] sm:$0xf]  ;;  %v1019_v61 = vld [vmem:[#allocation10 + $0x14] sm:$0xf0] }
  0x37   :  { %485 = vmatpush.bf16.msra.mxu3 %v842_v29  ;;  %v1018_v62 = vld [vmem:[#allocation10 + $0x14] sm:$0xf]  ;;  %v818_v63 = vor.u32 %v1019_v61, %v817_v60  ;;  %v819_v0 = vld [vmem:[#allocation10 + $0x18] sm:$0xf0]  ;;  %v889_v2 = vld [vmem:[#allocation10 + $0xa0] sm:$0xf] }
  0x38   :  { %260 = vmatpush.bf16.msra.mxu1 %v754_v43  ;;  %v1038_v43 = vld [vmem:[#allocation10 + $0xb4] sm:$0xf]  ;;  %v822_v1 = vor.u32 %v1018_v62, %v819_v0  ;;  %v1036_v4 = vld [vmem:[#allocation10 + $0xa4] sm:$0xf]  ;;  %v891_v6 = vld [vmem:[#allocation10 + $0xa8] sm:$0xf0] }
  0x39   :  { %273 = vmatpush.bf16.msra.mxu2 %v758_v45  ;;  %v838_v45 = vor.u32 %v1022_v36, %v835_v37  ;;  %v894_v7 = vor.u32 %v1036_v4, %v891_v6  ;;  %v809_v8 = vld [vmem:[#allocation10] sm:$0xf]  ;;  %v1017_v9 = vld [vmem:[#allocation10 + $0x4] sm:$0xf0]  ;;  %v1016_v10 = vld [vmem:[#allocation10 + $0x4] sm:$0xf] }
  0x3a   :  { %498 = vmatpush.bf16.msrb.mxu0 %v906_v38  ;;  %v810_v11 = vor.u32 %v1017_v9, %v809_v8  ;;  %v811_v12 = vld [vmem:[#allocation10 + $0x8] sm:$0xf0]  ;;  %v881_v14 = vld [vmem:[#allocation10 + $0x90] sm:$0xf]  ;;  %v1035_v15 = vld [vmem:[#allocation10 + $0x94] sm:$0xf0] }
  0x3b   :  { %486 = vmatpush.bf16.msra.mxu3 %v834_v41  ;;  %v814_v13 = vor.u32 %v1016_v10, %v811_v12  ;;  %v1034_v17 = vld [vmem:[#allocation10 + $0x94] sm:$0xf]  ;;  %v883_v18 = vld [vmem:[#allocation10 + $0x98] sm:$0xf0]  ;;  %v873_v20 = vld [vmem:[#allocation10 + $0x80] sm:$0xf] }
  0x3c   :  { %261 = vmatpush.bf16.msra.mxu1 %v746_v49  ;;  %v827_v49 = vld [vmem:[#allocation10 + $0x28] sm:$0xf0]  ;;  %v1033_v21 = vld [vmem:[#allocation10 + $0x84] sm:$0xf0]  ;;  %v1032_v22 = vld [vmem:[#allocation10 + $0x84] sm:$0xf] }
  0x3d   :  { %274 = vmatpush.bf16.msra.mxu2 %v750_v51  ;;  %v902_v51 = vor.u32 %v1038_v43, %v899_v44  ;;  %v830_v53 = vor.u32 %v1020_v48, %v827_v49  ;;  %v874_v23 = vor.u32 %v1033_v21, %v873_v20  ;;  %v875_v24 = vld [vmem:[#allocation10 + $0x88] sm:$0xf0]  ;;  %v1055_v26 = vld [vmem:[#allocation11 + $0x38] sm:$0xff]  ;;  %v1054_v28 = vld [vmem:[#allocation11 + $0x30] sm:$0xff]  ;;  %v696_v21 = vlaneseq  ;;  %s729_s1 = sshll.u32 %s1359_s9, 4  ;;  %s730_s1 = int_to_ptr.hbm [resolvable:$true] %s729_s1 }
  0x3e   :  { %499 = vmatpush.bf16.msrb.mxu0 %v898_v50  ;;  %v878_v25 = vor.u32 %v1032_v22, %v875_v24  ;;  %v1062_v29 = vld [vmem:[#allocation11 + $0x70] sm:$0xff]  ;;  %v1053_v30 = vld [vmem:[#allocation11 + $0x28] sm:$0xff]  ;;  %v1052_v32 = vld [vmem:[#allocation11 + $0x20] sm:$0xff] }
  0x3f   :  { %487 = vmatpush.bf16.msra.mxu3 %v826_v52  ;;  %v1061_v31 = vld [vmem:[#allocation11 + $0x68] sm:$0xff]  ;;  %v1051_v46 = vld [vmem:[#allocation11 + $0x18] sm:$0xff]  ;;  %v1060_v47 = vld [vmem:[#allocation11 + $0x60] sm:$0xff]  ;;  %v697_v24 = vand.u32 127, %v696_v21 }
  0x40   :  { %508 = vmatpush.bf16.msrb.mxu1 %v870_v59  ;;  %v1050_v48 = vld [vmem:[#allocation11 + $0x10] sm:$0xff]  ;;  %v1059_v49 = vld [vmem:[#allocation11 + $0x58] sm:$0xff]  ;;  %v1049_v50 = vld [vmem:[#allocation11 + $0x8] sm:$0xff] }
  0x41   :  { %521 = vmatpush.bf16.msrb.mxu2 %v934_v5  ;;  %v1048_v52 = vld [vmem:[#allocation11] sm:$0xff]  ;;  %v1076_v10 = vld [vmem:[%s1358_s8] ss:$0 sm:$0xff]  ;;  %s1269_s8 = smov [#allocation13]   ;;  %vm698_vm4 = vcmp.lt.s32.totalorder %v697_v24, 3 }
  0x42   :  { %s727_s20 = sshll.u32 %s1269_s8, 4  ;;  %s728_s20 = int_to_ptr.vmem [resolvable:$true] %s727_s20 }
  0x43   :  { %488 = vmatpush.bf16.msra.mxu3 %v818_v63 }
  0x44   :  { %509 = vmatpush.bf16.msrb.mxu1 %v862_v3  ;;  %v1037_v3 = vld [vmem:[#allocation10 + $0xa4] sm:$0xf0] }
  0x45   :  { %522 = vmatpush.bf16.msrb.mxu2 %v926_v16  ;;  %v890_v5 = vor.u32 %v1037_v3, %v889_v2  ;;  %v882_v16 = vor.u32 %v1035_v15, %v881_v14 }
  0x47   :  { %500 = vmatpush.bf16.msrb.mxu0 %v890_v5  ;;  %489 = vmatpush.bf16.msra.mxu3 %v810_v11 }
  0x48   :  { %510 = vmatpush.bf16.msrb.mxu1 %v854_v19  ;;  %v886_v19 = vor.u32 %v1034_v17, %v883_v18 }
  0x49   :  { %523 = vmatpush.bf16.msrb.mxu2 %v918_v27  ;;  %v1063_v27 = vld [vmem:[#allocation11 + $0x78] sm:$0xff] }
  0x4b   :  { %501 = vmatpush.bf16.msrb.mxu0 %v882_v16  ;;  %670 = vmatpush.bf16.msrb.mxu3 %v1055_v26 }
  0x4c   :  { %511 = vmatpush.bf16.msrb.mxu1 %v846_v33  ;;  %v168_v33 = vld [vmem:[%s1354_s4] sm:$0x3] }
  0x4d   :  { %524 = vmatpush.bf16.msrb.mxu2 %v910_v39  ;;  %v170_v34 = vperm.slane %v168_v33, 0  ;;  %v171_v38 = vperm.slane %v168_v33, 1 }
  0x4f   :  { %502 = vmatpush.bf16.msrb.mxu0 %v874_v23  ;;  %671 = vmatpush.bf16.msrb.mxu3 %v1054_v28 }
  0x50   :  { %512 = vmatpush.bf16.msrb.mxu1 %v838_v45 }
  0x51   :  { %525 = vmatpush.bf16.msrb.mxu2 %v902_v51  ;;  %v1058_v51 = vld [vmem:[#allocation11 + $0x50] sm:$0xff] }
  0x53   :  { %683 = vmatpush.bf16.msra.mxu0 %v1063_v27  ;;  %672 = vmatpush.bf16.msrb.mxu3 %v1053_v30 }
  0x54   :  { %513 = vmatpush.bf16.msrb.mxu1 %v830_v53  ;;  %v1057_v53 = vld [vmem:[#allocation11 + $0x48] sm:$0xff] }
  0x55   :  { %526 = vmatpush.bf16.msrb.mxu2 %v894_v7 }
  0x57   :  { %684 = vmatpush.bf16.msra.mxu0 %v1062_v29  ;;  %673 = vmatpush.bf16.msrb.mxu3 %v1052_v32 }
  0x58   :  { %514 = vmatpush.bf16.msrb.mxu1 %v822_v1 }
  0x59   :  { %527 = vmatpush.bf16.msrb.mxu2 %v886_v19 }
  0x5b   :  { %685 = vmatpush.bf16.msra.mxu0 %v1061_v31  ;;  %674 = vmatpush.bf16.msrb.mxu3 %v1051_v46 }
  0x5c   :  { %515 = vmatpush.bf16.msrb.mxu1 %v814_v13 }
  0x5d   :  { %528 = vmatpush.bf16.msrb.mxu2 %v878_v25 }
  0x5f   :  { %686 = vmatpush.bf16.msra.mxu0 %v1060_v47  ;;  %675 = vmatpush.bf16.msrb.mxu3 %v1050_v48 }
  0x63   :  { %687 = vmatpush.bf16.msra.mxu0 %v1059_v49  ;;  %676 = vmatpush.bf16.msrb.mxu3 %v1049_v50 }
  0x67   :  { %688 = vmatpush.bf16.msra.mxu0 %v1058_v51  ;;  %677 = vmatpush.bf16.msrb.mxu3 %v1048_v52 }
  0x6b   :  { %689 = vmatpush.bf16.msra.mxu0 %v1057_v53 }
  0x9e   :  { %v146_v55 = vpop.f32.mrf.mxu0 }
  0x9f   :  { %v147_v56 = vadd.f32 %v1075_v54, %v146_v55  ;;  %v1056_v54 = vld [vmem:[#allocation11 + $0x40] sm:$0xff] }
  0xa0   :  { %690 = vmatpush.bf16.msra.mxu0 %v1056_v54 }
  0xa1   :  { %v150_v57 = vmax.f32 %v147_v56, 0.0  ;;  %v316_v56 = vld [vmem:[%s1356_s6] sm:$0x3] }
  0xa2   :  { %v319_v60 = vperm.slane %v316_v56, 1 }
  0xa3   :  { %v151_v58 = vpack.c.bf16 %v150_v57, %v150_v57  ;;  %v318_v57 = vperm.slane %v316_v56, 0 }
  0xa5   :  { %262 = vmatmul.bf16.vlgmr.msra.gmra.mxu1 %v151_v58  ;;  %275 = vmatmul.bf16.vlgmr.msra.gmra.mxu2 %v151_v58 }
  0xa6   :  { %v148_v59 = vpop.f32.mrf.mxu0 }
 0x122   :  { %v263_v35 = vpop.f32.mrf.mxu1 }
 0x123   :  { %v264_v36 = vadd.f32 %v263_v35, %v170_v34 }
 0x125   :  { %v280_v37 = vmax.f32 %v264_v36, 0.0 }
 0x127   :  { %v282_v39 = vpack.c.bf16 %v280_v37, %v280_v37 }
 0x128   :  { %v276_v40 = vpop.f32.mrf.mxu2 }
 0x129   :  { %v277_v41 = vadd.f32 %v276_v40, %v171_v38  ;;  %490 = vmatmul.bf16.vlgmr.msra.gmra.mxu3 %v282_v39  ;;  %516 = vmatmul.bf16.vlgmr.msrb.gmra.mxu1 %v282_v39 }
 0x12a   :  { %v265_v42 = vpop.f32.mrf.mxu1 }
 0x12b   :  { %v281_v43 = vmax.f32 %v277_v41, 0.0 }
 0x12d   :  { %v283_v44 = vpack.c.bf16 %v281_v43, %v281_v43 }
 0x12f   :  { %503 = vmatmul.bf16.vlgmr.msrb.gmra.mxu0 %v283_v44  ;;  %529 = vmatmul.bf16.vlgmr.msrb.gmra.mxu2 %v283_v44 }
 0x130   :  { %v278_v45 = vpop.f32.mrf.mxu2 }
 0x1a6   :  { %v517_v55 = vpop.f32.mrf.mxu1 }
 0x1a7   :  { %v518_v0 = vadd.f32 %v517_v55, %v319_v60 }
 0x1ac   :  { %v491_v58 = vpop.f32.mrf.mxu3  ;;  %v504_v59 = vpop.f32.mrf.mxu0 }
 0x1ad   :  { %v492_v61 = vadd.f32 %v491_v58, %v318_v57 }
 0x1ae   :  { %v519_v62 = vpop.f32.mrf.mxu1 }
 0x1af   :  { %v505_v63 = vadd.f32 %v504_v59, %v492_v61 }
 0x1b1   :  { %v534_v1 = vmax.f32 %v505_v63, 0.0 }
 0x1b2   :  { %v530_v2 = vpop.f32.mrf.mxu2 }
 0x1b3   :  { %v536_v3 = vpack.c.bf16 %v534_v1, %v534_v1  ;;  %v531_v4 = vadd.f32 %v530_v2, %v518_v0 }
 0x1b4   :  { %v493_v5 = vpop.f32.mrf.mxu3  ;;  %v506_v6 = vpop.f32.mrf.mxu0 }
 0x1b5   :  { %v535_v7 = vmax.f32 %v531_v4, 0.0  ;;  %678 = vmatmul.bf16.vlgmr.msrb.gmra.mxu3 %v536_v3 }
 0x1b7   :  { %v537_v8 = vpack.c.bf16 %v535_v7, %v535_v7 }
 0x1b9   :  { %691 = vmatmul.bf16.vlgmr.msra.gmra.mxu0 %v537_v8 }
 0x1ba   :  { %v532_v9 = vpop.f32.mrf.mxu2 }
 0x236   :  { %v692_v11 = vpop.f32.mrf.mxu0 }
 0x238   :  { %v679_v12 = vpop.f32.mrf.mxu3 }
 0x239   :  { %v680_v13 = vadd.f32 %v1076_v10, %v679_v12 }
 0x23b   :  { %v693_v14 = vadd.f32 %v692_v11, %v680_v13 }
 0x23d   :  { %v999_v15 = vmul.f32 -1.442695, %v693_v14 }
 0x23e   :  { %v694_v16 = vpop.f32.mrf.mxu0 }
 0x23f   :  { %1077 = vpow2.f32 %v999_v15 }
 0x240   :  { %v681_v17 = vpop.f32.mrf.mxu3 }
 0x245   :  { %v1078_v18 = vpop.eup %1077 }
 0x246   :  { %v702_v19 = vadd.f32 1.0, %v1078_v18 }
 0x248   :  { %1079 = vrcp.f32 %v702_v19  ;;  %v714_v25 = vand.u32 2147483648, %v702_v19  ;;  %v712_v27 = vand.u32 2147483647, %v702_v19  ;;  %vm708_vm3 = vweird.f32 %v702_v19 }
 0x24a   :  { %v715_v29 = vor.u32 1.1754944e-38, %v714_v25  ;;  %vm713_vm6 = vcmp.eq.f32.partialorder %v712_v27, 8.507059e+37 }
 0x24e   :  { %v1080_v20 = vpop.eup %1079 }
 0x24f   :  { %v704_v22 = vmul.f32 %v1080_v20, %v702_v19  ;;  %vm709_vm2 = vweird.f32 %v1080_v20 }
 0x250   :  { %vm710_vm5 = vmor %vm708_vm3, %vm709_vm2 }
 0x251   :  { %v705_v23 = vsub.f32 1.0, %v704_v22 }
 0x253   :  { %v706_v26 = vmul.f32 %v1080_v20, %v705_v23 }
 0x255   :  { %v707_v28 = vadd.f32 %v1080_v20, %v706_v26 }
 0x257   :  { %v711_v30 = vsel %vm710_vm5, %v1080_v20, %v707_v28 }
 0x258   :  { %v716_v31 = vsel %vm713_vm6, %v715_v29, %v711_v30 }
 0x259   :  { %v720_v32 = vsel %vm698_vm4, %v716_v31, %v693_v14 }
 0x25a   :  { %721 = vst [vmem:[#allocation13] sm:$0xff] %v720_v32 }
 0x25b   :  { %732 = dma.vmem_to_hbm [thread:$0]  %s728_s20, 128, %s730_s1, [#allocation4]  }
 0x25c   :  { %1257 = dma.done.wait [#allocation4], 128  }
 0x25d   :  { %1258 = vsyncadd [#allocation4], 4294967168 }
 0x25e   :  { %737 = vsyncpa [#allocation3], 1 }
 0x25f   :  { %738 = vsyncpa [#allocation6], 1 }
 0x260   :  { %739 = vsyncpa [#allocation9], 1 }
 0x261   :  { %740 = vsyncpa [#allocation12], 1 }
 0x262   :  { %741 = vsyncpa [#allocation4], 1 }

</bundles_post_ra>
